<compile_context>
chip_gen: v7x
topology: tpu7x:2x2x1
jax: 0.10.0
libtpu: 0.0.40
codegen_flags: <defaults>
</compile_context>

<pallas_src>
import functools

import jax
import jax.numpy as jnp
from jax import lax
from jax.experimental import pallas as pl
from jax.experimental.pallas import tpu as pltpu


def _round_up(x, m):
    return ((x + m - 1) // m) * m


def _vmem_capacity_bytes():
    """Per-core VMEM capacity; conservative 64 MiB (v7x) fallback."""
    try:
        return int(pltpu.get_tpu_info().vmem_capacity_bytes)
    except Exception:
        return 64 * 1024 * 1024


def _cubic_sample_kernel(idx_ref, feat_ref, out_ref, acc_ref, *,
                         ts_inner, n_inner, split_f32):
    # idx_ref : (1, TNV)        int32  linear corner index into flat grid, -1 = OOB
    # feat_ref: (C, TS_BLOCK)   f32/bf16 flattened feature grid block (channel-major)
    # out_ref : (C, TNV)        f32 gathered corner features (NV lane-dense)
    # acc_ref : (C, TNV)        f32 accumulator scratch (persists across S blocks)
    si = pl.program_id(2)
    ts_block = n_inner * ts_inner
    base = si * ts_block

    @pl.when(si == 0)
    def _init():
        acc_ref[...] = jnp.zeros_like(acc_ref)

    idx = idx_ref[...]                                      # (1, TNV) int32
    row = lax.broadcasted_iota(jnp.int32, (ts_inner, 1), 0)  # (ts_inner, 1)

    # Static unroll over lane chunks of the S block -> bounded one-hot size,
    # no dynamic minor-dim slicing needed.
    for j in range(n_inner):
        s0 = j * ts_inner
        chunk = feat_ref[:, s0:s0 + ts_inner]               # (C, ts_inner)
        local = idx - (base + s0)                           # (1, TNV)
        # Corners outside this chunk (or invalid, idx == -1) never match ->
        # contribute exact zeros (matches the CUDA out-of-grid behavior).
        onehot = (row == local).astype(jnp.bfloat16)        # (ts_inner, TNV)

        if split_f32:
            # Exact-ish f32 gather with 3 bf16 MXU passes (vs 6 for HIGHEST).
            hi = chunk.astype(jnp.bfloat16)
            r1 = chunk - hi.astype(jnp.float32)
            mid = r1.astype(jnp.bfloat16)
            lo = (r1 - mid.astype(jnp.float32)).astype(jnp.bfloat16)
            part = (jnp.dot(hi, onehot, preferred_element_type=jnp.float32)
                    + jnp.dot(mid, onehot, preferred_element_type=jnp.float32)
                    + jnp.dot(lo, onehot, preferred_element_type=jnp.float32))
        else:
            part = jnp.dot(chunk, onehot.astype(chunk.dtype),
                           preferred_element_type=jnp.float32)

        acc_ref[...] += part

    @pl.when(si == pl.num_programs(2) - 1)
    def _store():
        out_ref[...] = acc_ref[...].astype(out_ref.dtype)


def _corner_indices(ptcloud, scales):
    """Elementwise glue: scaled coords -> 8 linear corner indices per point."""
    sx, sy, sz = scales
    sf = (jnp.array([sx, sy, sz], jnp.float32) - 1.0) * 0.5
    p = (ptcloud.astype(jnp.float32) + 1.0) * sf            # (B, N, 3)
    lower = jnp.floor(p)
    upper = jnp.ceil(p)
    upper = jnp.where(upper == lower, upper + 1.0, upper)
    lower = lower.astype(jnp.int32)
    upper = upper.astype(jnp.int32)
    corners = jnp.stack([lower, upper], axis=-1)             # (B, N, 3, 2)

    # Corner ordering matches the CUDA loops: x outer, y middle, z inner.
    sel_x = jnp.array([0, 0, 0, 0, 1, 1, 1, 1], jnp.int32)
    sel_y = jnp.array([0, 0, 1, 1, 0, 0, 1, 1], jnp.int32)
    sel_z = jnp.array([0, 1, 0, 1, 0, 1, 0, 1], jnp.int32)
    jx = corners[..., 0, :][..., sel_x]                      # (B, N, 8)
    jy = corners[..., 1, :][..., sel_y]
    jz = corners[..., 2, :][..., sel_z]

    valid = ((jx >= 0) & (jx < sx) &
             (jy >= 0) & (jy < sy) &
             (jz >= 0) & (jz < sz))
    lin = jx * (sy * sz) + jy * sz + jz
    idx = jnp.where(valid, lin, -1).astype(jnp.int32)        # (B, N, 8)
    return idx, valid


def cubic_feature_sampling(ptcloud, cubic_features, neighborhood_size=1, *,
                           max_nv_tile=2048, inner_chunk=512, max_inner_chunks=64):
    """ptcloud: (B, N, 3) float in [-1, 1]; cubic_features: (B, C, Sx, Sy, Sz).

    Returns point_features: (B, N, 8, C) float32.
    """
    if cubic_features.ndim != 5:
        raise ValueError('cubic_features must be 5D (B, C, Dx, Dy, Dz)')
    if ptcloud.ndim != 3:
        raise ValueError('ptcloud must be 3D (B, N, 3)')
    # TODO(synk): only neighborhood_size=1 (8-corner sampling) is implemented,
    # matching the CUDA kernel's supported configuration.
    assert neighborhood_size == 1

    B, C, Sx, Sy, Sz = cubic_features.shape
    N = ptcloud.shape[1]
    S = Sx * Sy * Sz
    NV = N * 8

    # Feature dtype policy: bf16 stays bf16 (1 MXU pass); everything else is
    # upcast to f32 and gathered via the exact 3-way bf16 split (3 MXU passes).
    # TODO(synk): int8/fp8 grids are upcast here (no portable int MXU on v7x).
    feat = cubic_features
    if feat.dtype != jnp.bfloat16:
        feat = feat.astype(jnp.float32)
    split_f32 = feat.dtype == jnp.float32
    itemsize = jnp.dtype(feat.dtype).itemsize

    # ---- VMEM budget ---------------------------------------------------------
    vmem_cap = _vmem_capacity_bytes()
    vmem_budget = int(vmem_cap * 0.75)

    ts_inner = min(inner_chunk, _round_up(S, 128))

    def vmem_est(tnv, n_inner):
        return (2 * C * n_inner * ts_inner * itemsize   # feat block (double buffered)
                + 2 * C * tnv * 4                       # out block (double buffered)
                + 2 * tnv * 4                           # idx block (double buffered)
                + C * tnv * 4                           # accumulator scratch
                + ts_inner * tnv * 2                    # bf16 one-hot chunk
                + 6 * C * ts_inner * 4                  # chunk + hi/mid/lo temps
                + 4 * C * tnv * 4)                      # dot / partial temps

    # ---- NV tiling (lane-dense output dim) -----------------------------------
    TNV = min(max_nv_tile, _round_up(NV, 128))
    while TNV > 128 and vmem_est(TNV, 1) > vmem_budget:
        TNV //= 2
    NV_pad = _round_up(NV, TNV)
    nvt = NV_pad // TNV
    # Keep both v7x TensorCores busy in the B == 1, single-NV-tile corner case.
    while B * nvt < 2 and TNV > 128:
        TNV //= 2
        NV_pad = _round_up(NV, TNV)
        nvt = NV_pad // TNV

    # ---- S tiling: hold the feature grid VMEM-resident when it fits ----------
    n_needed = -(-_round_up(S, ts_inner) // ts_inner)
    if n_needed <= max_inner_chunks and vmem_est(TNV, n_needed) <= vmem_budget:
        n_inner = n_needed                         # whole grid resident: st == 1
    else:
        # TODO(synk): very large grids / tiny C would be better served by a
        # gather-based path (the one-hot matmul does O(S) MACs per sample).
        n_inner = 1
        while (n_inner < 4 and n_inner * 2 <= n_needed
               and vmem_est(TNV, n_inner * 2) <= vmem_budget):
            n_inner *= 2
    TS_BLOCK = n_inner * ts_inner
    S_pad = _round_up(S, TS_BLOCK)
    st = S_pad // TS_BLOCK

    # ---- corner indices (tiny elementwise glue, plain JAX) --------------------
    idx, _ = _corner_indices(ptcloud, (Sx, Sy, Sz))          # (B, N, 8) int32
    idx = idx.reshape(B, NV)
    if NV_pad != NV:
        idx = jnp.pad(idx, ((0, 0), (0, NV_pad - NV)), constant_values=-1)
    idx = idx.reshape(B, 1, NV_pad)                          # lane-dense row

    # ---- feature grid: native layout/dtype, just flatten + pad spatial dims ---
    feat_flat = feat.reshape(B, C, S)
    if S_pad != S:
        feat_flat = jnp.pad(feat_flat, ((0, 0), (0, 0), (0, S_pad - S)))

    passes = 3 if split_f32 else 1
    feat_reads = 1 if st == 1 else nvt * st                  # blocks per batch
    cost = pl.CostEstimate(
        flops=2 * B * C * S_pad * NV_pad * passes,
        transcendentals=0,
        bytes_accessed=(B * feat_reads * C * TS_BLOCK * itemsize   # feat
                        + B * st * NV_pad * 4                      # idx
                        + B * C * NV_pad * 4),                     # output
    )

    vmem_limit = min(int(vmem_cap * 0.9),
                     max(32 * 1024 * 1024, int(vmem_est(TNV, n_inner) * 1.25)))

    kernel = functools.partial(_cubic_sample_kernel,
                               ts_inner=ts_inner, n_inner=n_inner,
                               split_f32=split_f32)

    out = pl.pallas_call(
        kernel,
        out_shape=jax.ShapeDtypeStruct((B, C, NV_pad), jnp.float32),
        grid=(B, nvt, st),
        in_specs=[
            pl.BlockSpec((None, 1, TNV), lambda b, nvi, si: (b, 0, nvi)),
            pl.BlockSpec((None, C, TS_BLOCK), lambda b, nvi, si: (b, 0, si)),
        ],
        out_specs=pl.BlockSpec((None, C, TNV), lambda b, nvi, si: (b, 0, nvi)),
        scratch_shapes=[pltpu.VMEM((C, TNV), jnp.float32)],
        compiler_params=pltpu.CompilerParams(
            dimension_semantics=("parallel", "parallel", "arbitrary"),
            vmem_limit_bytes=vmem_limit),
        cost_estimate=cost,
    )(idx, feat_flat)

    # Small layout fix on the (small) output only: (B, C, NV) -> (B, N, 8, C).
    # TODO(synk): consumers that contract over C could take the (B, C, N*8)
    # layout directly and skip this lane-narrow transpose.
    out = out[:, :, :NV].reshape(B, C, N, 8)
    return jnp.transpose(out, (0, 2, 3, 1))


def _reference(ptcloud, cubic_features):
    """Pure-JAX reference of the same forward pass."""
    B, C, Sx, Sy, Sz = cubic_features.shape
    idx, valid = _corner_indices(ptcloud, (Sx, Sy, Sz))      # (B, N, 8)
    feat_flat = cubic_features.astype(jnp.float32).reshape(B, C, -1)

    def per_batch(f, i, v):
        g = f[:, jnp.maximum(i, 0)]                          # (C, N, 8)
        g = jnp.moveaxis(g, 0, -1)                           # (N, 8, C)
        return jnp.where(v[..., None], g, 0.0)

    return jax.vmap(per_batch)(feat_flat, idx, valid)


if __name__ == "__main__":
    key = jax.random.PRNGKey(0)
    k1, k2 = jax.random.split(key)

    B, C, Sx, Sy, Sz = 2, 4, 8, 8, 8
    N = 64

    ptcloud = jax.random.uniform(k1, (B, N, 3), jnp.float32,
                                 minval=-1.0, maxval=1.0)
    cubic_features = jax.random.normal(k2, (B, C, Sx, Sy, Sz), jnp.float32)

    module = jax.jit(functools.partial(cubic_feature_sampling,
                                       neighborhood_size=1))
    out = jax.block_until_ready(module(ptcloud, cubic_features))

    ref = _reference(ptcloud, cubic_features)
    assert out.shape == (B, N, 8, C), out.shape
    assert jnp.allclose(out, ref, atol=1e-5, rtol=1e-5), "mismatch vs reference"

    print("KERNEL_OK")
</pallas_src>

<mosaic_0001>
module attributes {stable_mosaic.version = 11 : i64} {
  func.func @_cubic_sample_kernel(%arg0: i32, %arg1: i32, %arg2: i32, %arg3: memref<1x1x512xi32, #tpu.memory_space<vmem>>, %arg4: memref<1x4x512xf32, #tpu.memory_space<vmem>>, %arg5: memref<1x4x512xf32, #tpu.memory_space<vmem>>, %arg6: memref<4x512xf32, #tpu.memory_space<vmem>>) attributes {dimension_semantics = [#tpu.dimension_semantics<parallel>, #tpu.dimension_semantics<parallel>, #tpu.dimension_semantics<arbitrary>], iteration_bounds = array<i64: 2, 1, 1>, scalar_prefetch = 0 : i64, scratch_operands = 1 : i64, tpu.core_type = #tpu.core_type<tc>, window_params = [{transform_indices = @transform_0, window_bounds = array<i64: 1, 1, 512>}, {transform_indices = @transform_1, window_bounds = array<i64: 1, 4, 512>}, {transform_indices = @transform_2, window_bounds = array<i64: 1, 4, 512>}]} {
    %c512_i32 = arith.constant 512 : i32
    %0 = arith.muli %arg2, %c512_i32 : i32
    %c0_i32 = arith.constant 0 : i32
    %1 = arith.cmpi eq, %arg2, %c0_i32 : i32
    %2 = arith.extui %1 : i1 to i32
    %c0_i32_0 = arith.constant 0 : i32
    %3 = arith.cmpi ne, %2, %c0_i32_0 : i32
    scf.if %3 {
      %cst_15 = arith.constant 0.000000e+00 : f32
      %36 = vector.broadcast %cst_15 : f32 to vector<4x512xf32>
      %c0_16 = arith.constant 0 : index
      %c0_17 = arith.constant 0 : index
      %37 = vector.load %arg6[%c0_16, %c0_17] : memref<4x512xf32, #tpu.memory_space<vmem>>, vector<4x512xf32>
      tpu.vector_store %arg6[%c0_16, %c0_17], %36 {strides = array<i32>} : memref<4x512xf32, #tpu.memory_space<vmem>>, vector<4x512xf32>,
    } else {
    }
    %c0 = arith.constant 0 : index
    %c0_1 = arith.constant 0 : index
    %c0_2 = arith.constant 0 : index
    %4 = vector.load %arg3[%c0, %c0_1, %c0_2] : memref<1x1x512xi32, #tpu.memory_space<vmem>>, vector<1x1x512xi32>
    %5 = vector.shape_cast %4 : vector<1x1x512xi32> to vector<1x512xi32>
    %6 = tpu.iota {dimensions = array<i32: 0>} : vector<512x1xi32>
    %c0_3 = arith.constant 0 : index
    %c0_4 = arith.constant 0 : index
    %c0_5 = arith.constant 0 : index
    %7 = vector.load %arg4[%c0_3, %c0_4, %c0_5] : memref<1x4x512xf32, #tpu.memory_space<vmem>>, vector<1x4x512xf32>
    %8 = vector.shape_cast %7 : vector<1x4x512xf32> to vector<4x512xf32>
    %c0_i32_6 = arith.constant 0 : i32
    %9 = arith.addi %0, %c0_i32_6 : i32
    %10 = vector.broadcast %9 : i32 to vector<1x512xi32>
    %11 = arith.subi %5, %10 : vector<1x512xi32>
    %12 = vector.broadcast %6 : vector<512x1xi32> to vector<512x512xi32>
    %13 = vector.broadcast %11 : vector<1x512xi32> to vector<512x512xi32>
    %14 = arith.cmpi eq, %12, %13 : vector<512x512xi32>
    %15 = arith.extui %14 : vector<512x512xi1> to vector<512x512xi32>
    %16 = arith.sitofp %15 : vector<512x512xi32> to vector<512x512xf32>
    %17 = arith.truncf %16 : vector<512x512xf32> to vector<512x512xbf16>
    %18 = arith.truncf %8 : vector<4x512xf32> to vector<4x512xbf16>
    %19 = arith.extf %18 : vector<4x512xbf16> to vector<4x512xf32>
    %20 = arith.subf %8, %19 : vector<4x512xf32>
    %21 = arith.truncf %20 : vector<4x512xf32> to vector<4x512xbf16>
    %22 = arith.extf %21 : vector<4x512xbf16> to vector<4x512xf32>
    %23 = arith.subf %20, %22 : vector<4x512xf32>
    %24 = arith.truncf %23 : vector<4x512xf32> to vector<4x512xbf16>
    %cst = arith.constant dense<0.000000e+00> : vector<4x512xf32>
    %25 = tpu.matmul %18, %17, %cst {dimension_numbers = #tpu.dot_dimension_numbers<[1], [0], [0], [1], [0, 0, 1, 1], [], []>} : vector<4x512xbf16>, vector<512x512xbf16>, vector<4x512xf32> -> vector<4x512xf32>
    %cst_7 = arith.constant dense<0.000000e+00> : vector<4x512xf32>
    %26 = tpu.matmul %21, %17, %cst_7 {dimension_numbers = #tpu.dot_dimension_numbers<[1], [0], [0], [1], [0, 0, 1, 1], [], []>} : vector<4x512xbf16>, vector<512x512xbf16>, vector<4x512xf32> -> vector<4x512xf32>
    %27 = arith.addf %25, %26 : vector<4x512xf32>
    %cst_8 = arith.constant dense<0.000000e+00> : vector<4x512xf32>
    %28 = tpu.matmul %24, %17, %cst_8 {dimension_numbers = #tpu.dot_dimension_numbers<[1], [0], [0], [1], [0, 0, 1, 1], [], []>} : vector<4x512xbf16>, vector<512x512xbf16>, vector<4x512xf32> -> vector<4x512xf32>
    %29 = arith.addf %27, %28 : vector<4x512xf32>
    %c0_9 = arith.constant 0 : index
    %c0_10 = arith.constant 0 : index
    %30 = vector.load %arg6[%c0_9, %c0_10] : memref<4x512xf32, #tpu.memory_space<vmem>>, vector<4x512xf32>
    %31 = arith.addf %30, %29 : vector<4x512xf32>
    %c0_11 = arith.constant 0 : index
    %c0_12 = arith.constant 0 : index
    %32 = vector.load %arg6[%c0_11, %c0_12] : memref<4x512xf32, #tpu.memory_space<vmem>>, vector<4x512xf32>
    tpu.vector_store %arg6[%c0_11, %c0_12], %31 {strides = array<i32>} : memref<4x512xf32, #tpu.memory_space<vmem>>, vector<4x512xf32>,
    %c0_i32_13 = arith.constant 0 : i32
    %33 = arith.cmpi eq, %arg2, %c0_i32_13 : i32
    %34 = arith.extui %33 : i1 to i32
    %c0_i32_14 = arith.constant 0 : i32
    %35 = arith.cmpi ne, %34, %c0_i32_14 : i32
    scf.if %35 {
      %c0_15 = arith.constant 0 : index
      %c0_16 = arith.constant 0 : index
      %36 = vector.load %arg6[%c0_15, %c0_16] : memref<4x512xf32, #tpu.memory_space<vmem>>, vector<4x512xf32>
      %c0_17 = arith.constant 0 : index
      %c0_18 = arith.constant 0 : index
      %c0_19 = arith.constant 0 : index
      %37 = vector.load %arg5[%c0_17, %c0_18, %c0_19] : memref<1x4x512xf32, #tpu.memory_space<vmem>>, vector<1x4x512xf32>
      %38 = vector.shape_cast %37 : vector<1x4x512xf32> to vector<4x512xf32>
      %39 = vector.shape_cast %36 : vector<4x512xf32> to vector<1x4x512xf32>
      tpu.vector_store %arg5[%c0_17, %c0_18, %c0_19], %39 {strides = array<i32>} : memref<1x4x512xf32, #tpu.memory_space<vmem>>, vector<1x4x512xf32>,
    } else {
    }
    return
  }
  func.func @transform_0(%arg0: i32, %arg1: i32, %arg2: i32) -> (i32, i32, i32) {
    %c0_i32 = arith.constant 0 : i32
    %c0_i32_0 = arith.constant 0 : i32
    return %arg0, %c0_i32, %arg1 : i32, i32, i32
  }
  func.func @transform_1(%arg0: i32, %arg1: i32, %arg2: i32) -> (i32, i32, i32) {
    %c0_i32 = arith.constant 0 : i32
    %c0_i32_0 = arith.constant 0 : i32
    return %arg0, %c0_i32, %arg2 : i32, i32, i32
  }
  func.func @transform_2(%arg0: i32, %arg1: i32, %arg2: i32) -> (i32, i32, i32) {
    %c0_i32 = arith.constant 0 : i32
    %c0_i32_0 = arith.constant 0 : i32
    return %arg0, %c0_i32, %arg1 : i32, i32, i32
  }
}

</mosaic_0001>

<bundles_post_ra>
// kernel: cubic_feature_sampling.1
= control target key start
LH: loop header
LB: loop body
LE: loop exit
PB: predicated region body
PF: predicated region fallthrough
CT: control target
= control target key end

     0   :  { %s3037_s9 = smov 0   ;;  %s3039_s10 = smov 0   ;;  %s5207_s0 = inlined_call_operand.vmem [shape: s32[2,1,512], index: 0, kind: input, shape index: {}]   ;;  %s5208_s1 = inlined_call_operand.vmem [shape: f32[2,4,512], index: 1, kind: input, shape index: {}]   ;;  %s5209_s2 = inlined_call_operand.vmem [shape: f32[2,4,512], index: 2, kind: output, shape index: {}]  }
   0x1   :  { %s3041_s11 = smov 0  }
   0x2 LB: > { %s31_s12 = sadd.s32 1, %s3015_s10  ;;  %p1896_p0 = scmp.ge.s32.totalorder %s3019_s11, 1  ;;  %s3019_s11 = sphi %s3041_s11, %s12_s11   ;;  %s3015_s10 = sphi %s3039_s10, %s6342_s10   ;;  %s3011_s9 = sphi %s3037_s9, %s6341_s9  }
   0x3   : > { %p33_p1 = scmp.ge.s32.totalorder %s31_s12, 2  ;;  %p156_p2 = scmp.lt.s32.totalorder %s3019_s11, 3 }
   0x5   : > { %s6344_s12 = smov (%p33_p1, %s31_s12), 0  ;;  %p157_p3 = pnand %p1896_p0, %p156_p2 }
   0x7   : > { %160 = sbr.rel (%p157_p3) target bundleno = 638 (0x27e), region = 28 }
   0xe   : > { %p195_p4 = scmp.lt.s32.totalorder %s3011_s9, 1  ;;  %v231_v0 = vlaneseq  ;;  %v3021_v15 = vmov 1.0|1.0   ;;  %v5618_v21 = vmov 0  ;;  %v5620_v22 = vmov 0 }
   0xf   : > { %v5622_v25 = vmov 0  ;;  %v5624_v26 = vmov 0  ;;  %v5626_v27 = vmov 0  ;;  %v5628_v28 = vmov 0 }
  0x10   : > { %s6346_s9 = smov (!%p195_p4, %s3011_s9), 1  ;;  %v3057_v1 = vshrl.u32 %v231_v0, 7  ;;  %v5630_v31 = vmov 0  ;;  %v5632_v32 = vmov 0  ;;  %v5634_v33 = vmov 0 }
  0x11   : > { %s1897_s13 = sshll.u32 %s6346_s9, 2  ;;  %v5636_v34 = vmov 0  ;;  %v5638_v37 = vmov 0  ;;  %v5640_v38 = vmov 0  ;;  %v5642_v39 = vmov 0  ;;  %s2928_s17 = sshll.u32 %s6346_s9, 4 }
  0x12   : > { %v306_v2 = vsub.s32 1, %v3057_v1  ;;  %v314_v3 = vsub.s32 3, %v3057_v1  ;;  %v302_v4 = vsub.s32 0, %v3057_v1  ;;  %s201_s16 = scalar_lea.vmem %s5207_s0, %s1897_s13  ;;  %v233_v5 = vadd.s32 8, %v3057_v1  ;;  %s3348_s20 = scalar_lea.vmem %s5208_s1, %s2928_s17 }
  0x13   : > { %v310_v6 = vsub.s32 2, %v3057_v1  ;;  %v230_v7 = vld [vmem:[%s201_s16] sm:$0xf]  ;;  %v234_v8 = vadd.s32 16, %v3057_v1  ;;  %v235_v9 = vadd.s32 24, %v3057_v1  ;;  %v236_v17 = vadd.s32 32, %v3057_v1  ;;  %s221_s23 = scalar_lea.vmem %s5209_s2, %s2928_s17 }
  0x14   : > { %v3070_v10 = vrot.slane %v230_v7, %v306_v2  ;;  %v3072_v11 = vrot.slane %v230_v7, %v314_v3  ;;  %v3074_v12 = vrot.slane %v230_v7, %v302_v4  ;;  %v237_v18 = vadd.s32 40, %v3057_v1  ;;  %v3380_v61 = vld [vmem:[%s3348_s20] sm:$0xff] }
  0x15   : > { %v3076_v13 = vrot.slane %v230_v7, %v310_v6  ;;  %v238_v23 = vadd.s32 48, %v3057_v1  ;;  %v239_v24 = vadd.s32 56, %v3057_v1  ;;  %v240_v29 = vadd.s32 64, %v3057_v1 }
  0x16   : > { %vm317_vm0 = vcmp.eq.s32.totalorder %v3057_v1, %v3070_v10  ;;  %vm321_vm1 = vcmp.eq.s32.totalorder %v233_v5, %v3070_v10  ;;  %vm319_vm2 = vcmp.eq.s32.totalorder %v3057_v1, %v3072_v11  ;;  %vm323_vm3 = vcmp.eq.s32.totalorder %v233_v5, %v3072_v11 }
  0x17   : > { %vm3084_vm4 = vmpackc.low %vm321_vm1, %vm317_vm0  ;;  %vm316_vm5 = vcmp.eq.s32.totalorder %v3057_v1, %v3074_v12  ;;  %vm320_vm6 = vcmp.eq.s32.totalorder %v233_v5, %v3074_v12  ;;  %vm318_vm7 = vcmp.eq.s32.totalorder %v3057_v1, %v3076_v13  ;;  %vm322_vm8 = vcmp.eq.s32.totalorder %v233_v5, %v3076_v13 }
  0x18   : > { %2159 = vmatprep.subr.msk.bf16.mxu0 %vm3084_vm4, %v3021_v15  ;;  %vm3097_vm9 = vmpackc.low %vm323_vm3, %vm319_vm2  ;;  %vm325_vm10 = vcmp.eq.s32.totalorder %v234_v8, %v3070_v10  ;;  %vm329_vm11 = vcmp.eq.s32.totalorder %v235_v9, %v3070_v10  ;;  %vm327_vm13 = vcmp.eq.s32.totalorder %v234_v8, %v3072_v11  ;;  %vm331_vm14 = vcmp.eq.s32.totalorder %v235_v9, %v3072_v11 }
  0x19   : > { %2287 = vmatprep.subr.msk.bf16.mxu1 %vm3097_vm9, %v3021_v15  ;;  %vm3108_vm12 = vmpackc.low %vm320_vm6, %vm316_vm5  ;;  %vm324_vm0 = vcmp.eq.s32.totalorder %v234_v8, %v3074_v12  ;;  %vm328_vm1 = vcmp.eq.s32.totalorder %v235_v9, %v3074_v12  ;;  %vm326_vm3 = vcmp.eq.s32.totalorder %v234_v8, %v3076_v13  ;;  %vm330_vm5 = vcmp.eq.s32.totalorder %v235_v9, %v3076_v13 }
  0x1a   : > { %2161 = vmatpush1.bf16.msk.msra.mxu0 %vm3108_vm12, %v3021_v15  ;;  %vm3117_vm15 = vmpackc.low %vm322_vm8, %vm318_vm7  ;;  %vm333_vm7 = vcmp.eq.s32.totalorder %v236_v17, %v3070_v10  ;;  %vm337_vm8 = vcmp.eq.s32.totalorder %v237_v18, %v3070_v10  ;;  %v241_v30 = vadd.s32 72, %v3057_v1  ;;  %v242_v35 = vadd.s32 80, %v3057_v1 }
  0x1b   : > { %2289 = vmatpush1.bf16.msk.msra.mxu1 %vm3117_vm15, %v3021_v15  ;;  %vm3126_vm2 = vmpackc.low %vm329_vm11, %vm325_vm10  ;;  %vm335_vm11 = vcmp.eq.s32.totalorder %v236_v17, %v3072_v11  ;;  %v243_v36 = vadd.s32 88, %v3057_v1  ;;  %v5644_v40 = vmov 0  ;;  %v244_v41 = vadd.s32 96, %v3057_v1 }
  0x1c   : > { %v5619_v21 = vsel %vm3126_vm2, 4294967295, %v5618_v21  ;;  %2163 = vmatprep.subr.msk.bf16.mxu0 %vm3126_vm2, %v3021_v15  ;;  %vm3135_vm6 = vmpackc.low %vm331_vm14, %vm327_vm13  ;;  %vm339_vm13 = vcmp.eq.s32.totalorder %v237_v18, %v3072_v11  ;;  %vm332_vm2 = vcmp.eq.s32.totalorder %v236_v17, %v3074_v12  ;;  %v245_v42 = vadd.s32 104, %v3057_v1 }
  0x1d   : > { %v5621_v22 = vsel %vm3135_vm6, 4294967295, %v5620_v22  ;;  %2291 = vmatprep.subr.msk.bf16.mxu1 %vm3135_vm6, %v3021_v15  ;;  %vm3146_vm10 = vmpackc.low %vm328_vm1, %vm324_vm0  ;;  %vm336_vm6 = vcmp.eq.s32.totalorder %v237_v18, %v3074_v12  ;;  %vm334_vm1 = vcmp.eq.s32.totalorder %v236_v17, %v3076_v13  ;;  %v5646_v43 = vmov 0 }
  0x1e   : > { %v5623_v25 = vsel %vm3146_vm10, 4294967295, %v5622_v25  ;;  %2165 = vmatpush1.bf16.msk.msra.mxu0 %vm3146_vm10, %v3021_v15  ;;  %vm3155_vm14 = vmpackc.low %vm330_vm5, %vm326_vm3  ;;  %vm338_vm10 = vcmp.eq.s32.totalorder %v237_v18, %v3076_v13  ;;  %vm341_vm5 = vcmp.eq.s32.totalorder %v238_v23, %v3070_v10  ;;  %v5648_v44 = vmov 0 }
  0x1f   : > { %v5625_v26 = vsel %vm3155_vm14, 4294967295, %v5624_v26  ;;  %2293 = vmatpush1.bf16.msk.msra.mxu1 %vm3155_vm14, %v3021_v15  ;;  %vm3164_vm0 = vmpackc.low %vm337_vm8, %vm333_vm7  ;;  %vm345_vm14 = vcmp.eq.s32.totalorder %v239_v24, %v3070_v10  ;;  %vm343_vm8 = vcmp.eq.s32.totalorder %v238_v23, %v3072_v11  ;;  %v5650_v45 = vmov 0 }
  0x20   : > { %v5627_v27 = vsel %vm3164_vm0, 4294967295, %v5626_v27  ;;  %2167 = vmatprep.subr.msk.bf16.mxu0 %vm3164_vm0, %v3021_v15  ;;  %vm3173_vm3 = vmpackc.low %vm339_vm13, %vm335_vm11  ;;  %vm347_vm11 = vcmp.eq.s32.totalorder %v239_v24, %v3072_v11  ;;  %vm340_vm0 = vcmp.eq.s32.totalorder %v238_v23, %v3074_v12  ;;  %v5652_v46 = vmov 0 }
  0x21   : > { %v5629_v28 = vsel %vm3173_vm3, 4294967295, %v5628_v28  ;;  %2295 = vmatprep.subr.msk.bf16.mxu1 %vm3173_vm3, %v3021_v15  ;;  %vm3184_vm7 = vmpackc.low %vm336_vm6, %vm332_vm2  ;;  %vm344_vm3 = vcmp.eq.s32.totalorder %v239_v24, %v3074_v12  ;;  %vm342_vm6 = vcmp.eq.s32.totalorder %v238_v23, %v3076_v13  ;;  %v246_v47 = vadd.s32 112, %v3057_v1 }
  0x22   : > { %v5631_v31 = vsel %vm3184_vm7, 4294967295, %v5630_v31  ;;  %2169 = vmatpush1.bf16.msk.msra.mxu0 %vm3184_vm7, %v3021_v15  ;;  %vm3193_vm13 = vmpackc.low %vm338_vm10, %vm334_vm1  ;;  %vm346_vm7 = vcmp.eq.s32.totalorder %v239_v24, %v3076_v13  ;;  %vm349_vm1 = vcmp.eq.s32.totalorder %v240_v29, %v3070_v10  ;;  %v247_v48 = vadd.s32 120, %v3057_v1 }
  0x23   : > { %v5633_v32 = vsel %vm3193_vm13, 4294967295, %v5632_v32  ;;  %2297 = vmatpush1.bf16.msk.msra.mxu1 %vm3193_vm13, %v3021_v15  ;;  %vm3202_vm2 = vmpackc.low %vm345_vm14, %vm341_vm5  ;;  %vm353_vm13 = vcmp.eq.s32.totalorder %v241_v30, %v3070_v10  ;;  %vm351_vm5 = vcmp.eq.s32.totalorder %v240_v29, %v3072_v11  ;;  %v5654_v49 = vmov 0 }
  0x24   : > { %v5635_v33 = vsel %vm3202_vm2, 4294967295, %v5634_v33  ;;  %2171 = vmatprep.subr.msk.bf16.mxu0 %vm3202_vm2, %v3021_v15  ;;  %vm3211_vm10 = vmpackc.low %vm347_vm11, %vm343_vm8  ;;  %vm355_vm8 = vcmp.eq.s32.totalorder %v241_v30, %v3072_v11  ;;  %vm348_vm2 = vcmp.eq.s32.totalorder %v240_v29, %v3074_v12  ;;  %v5656_v50 = vmov 0 }
  0x25   : > { %v5637_v34 = vsel %vm3211_vm10, 4294967295, %v5636_v34  ;;  %2299 = vmatprep.subr.msk.bf16.mxu1 %vm3211_vm10, %v3021_v15  ;;  %vm3222_vm14 = vmpackc.low %vm344_vm3, %vm340_vm0  ;;  %vm352_vm10 = vcmp.eq.s32.totalorder %v241_v30, %v3074_v12  ;;  %vm350_vm3 = vcmp.eq.s32.totalorder %v240_v29, %v3076_v13  ;;  %v5658_v51 = vmov 0 }
  0x26   : > { %v5639_v37 = vsel %vm3222_vm14, 4294967295, %v5638_v37  ;;  %2173 = vmatpush1.bf16.msk.msra.mxu0 %vm3222_vm14, %v3021_v15  ;;  %vm3231_vm11 = vmpackc.low %vm346_vm7, %vm342_vm6  ;;  %vm354_vm14 = vcmp.eq.s32.totalorder %v241_v30, %v3076_v13  ;;  %vm357_vm6 = vcmp.eq.s32.totalorder %v242_v35, %v3070_v10  ;;  %v5660_v52 = vmov 0 }
  0x27   : > { %v5641_v38 = vsel %vm3231_vm11, 4294967295, %v5640_v38  ;;  %2301 = vmatpush1.bf16.msk.msra.mxu1 %vm3231_vm11, %v3021_v15  ;;  %vm3240_vm0 = vmpackc.low %vm353_vm13, %vm349_vm1  ;;  %vm361_vm11 = vcmp.eq.s32.totalorder %v243_v36, %v3070_v10  ;;  %vm359_vm1 = vcmp.eq.s32.totalorder %v242_v35, %v3072_v11  ;;  %v248_v53 = vadd.s32 128, %v3057_v1 }
  0x28   : > { %v5643_v39 = vsel %vm3240_vm0, 4294967295, %v5642_v39  ;;  %2175 = vmatprep.subr.msk.bf16.mxu0 %vm3240_vm0, %v3021_v15  ;;  %vm3249_vm7 = vmpackc.low %vm355_vm8, %vm351_vm5  ;;  %vm363_vm5 = vcmp.eq.s32.totalorder %v243_v36, %v3072_v11  ;;  %vm356_vm0 = vcmp.eq.s32.totalorder %v242_v35, %v3074_v12  ;;  %v249_v54 = vadd.s32 136, %v3057_v1 }
  0x29   : > { %v5645_v40 = vsel %vm3249_vm7, 4294967295, %v5644_v40  ;;  %2303 = vmatprep.subr.msk.bf16.mxu1 %vm3249_vm7, %v3021_v15  ;;  %vm3260_vm13 = vmpackc.low %vm352_vm10, %vm348_vm2  ;;  %vm360_vm7 = vcmp.eq.s32.totalorder %v243_v36, %v3074_v12  ;;  %vm358_vm10 = vcmp.eq.s32.totalorder %v242_v35, %v3076_v13  ;;  %v5662_v55 = vmov 0 }
  0x2a   : > { %v5647_v43 = vsel %vm3260_vm13, 4294967295, %v5646_v43  ;;  %2177 = vmatpush1.bf16.msk.msra.mxu0 %vm3260_vm13, %v3021_v15  ;;  %vm3269_vm8 = vmpackc.low %vm354_vm14, %vm350_vm3  ;;  %vm362_vm14 = vcmp.eq.s32.totalorder %v243_v36, %v3076_v13  ;;  %vm365_vm13 = vcmp.eq.s32.totalorder %v244_v41, %v3070_v10  ;;  %v5664_v56 = vmov 0 }
  0x2b   : > { %v5649_v44 = vsel %vm3269_vm8, 4294967295, %v5648_v44  ;;  %2305 = vmatpush1.bf16.msk.msra.mxu1 %vm3269_vm8, %v3021_v15  ;;  %vm3278_vm2 = vmpackc.low %vm361_vm11, %vm357_vm6  ;;  %vm369_vm11 = vcmp.eq.s32.totalorder %v245_v42, %v3070_v10  ;;  %vm364_vm8 = vcmp.eq.s32.totalorder %v244_v41, %v3074_v12  ;;  %v5666_v57 = vmov 0 }
  0x2c   : > { %v5651_v45 = vsel %vm3278_vm2, 4294967295, %v5650_v45  ;;  %2179 = vmatprep.subr.msk.bf16.mxu0 %vm3278_vm2, %v3021_v15  ;;  %vm3287_vm3 = vmpackc.low %vm363_vm5, %vm359_vm1  ;;  %vm367_vm1 = vcmp.eq.s32.totalorder %v244_v41, %v3072_v11  ;;  %vm371_vm5 = vcmp.eq.s32.totalorder %v245_v42, %v3072_v11  ;;  %v5668_v58 = vmov 0 }
  0x2d   : > { %v5653_v46 = vsel %vm3287_vm3, 4294967295, %v5652_v46  ;;  %2307 = vmatprep.subr.msk.bf16.mxu1 %vm3287_vm3, %v3021_v15  ;;  %vm3298_vm6 = vmpackc.low %vm360_vm7, %vm356_vm0  ;;  %vm368_vm3 = vcmp.eq.s32.totalorder %v245_v42, %v3074_v12  ;;  %vm366_vm7 = vcmp.eq.s32.totalorder %v244_v41, %v3076_v13  ;;  %v250_v59 = vadd.s32 144, %v3057_v1 }
  0x2e   : > { %v5655_v49 = vsel %vm3298_vm6, 4294967295, %v5654_v49  ;;  %2181 = vmatpush1.bf16.msk.msra.mxu0 %vm3298_vm6, %v3021_v15  ;;  %vm3307_vm2 = vmpackc.low %vm362_vm14, %vm358_vm10  ;;  %vm370_vm10 = vcmp.eq.s32.totalorder %v245_v42, %v3076_v13  ;;  %vm373_vm6 = vcmp.eq.s32.totalorder %v246_v47, %v3070_v10  ;;  %v251_v60 = vadd.s32 152, %v3057_v1 }
  0x2f   : > { %v5657_v50 = vsel %vm3307_vm2, 4294967295, %v5656_v50  ;;  %2309 = vmatpush1.bf16.msk.msra.mxu1 %vm3307_vm2, %v3021_v15  ;;  %vm3317_vm0 = vmpackc.low %vm369_vm11, %vm365_vm13  ;;  %vm377_vm2 = vcmp.eq.s32.totalorder %v247_v48, %v3070_v10  ;;  %vm375_vm11 = vcmp.eq.s32.totalorder %v246_v47, %v3072_v11  ;;  %v5670_v62 = vmov 0 }
  0x30   : > { %v5659_v51 = vsel %vm3317_vm0, 4294967295, %v5658_v51  ;;  %2183 = vmatprep.subr.msk.bf16.mxu0 %vm3317_vm0, %v3021_v15  ;;  %vm3326_vm14 = vmpackc.low %vm371_vm5, %vm367_vm1  ;;  %vm379_vm1 = vcmp.eq.s32.totalorder %v247_v48, %v3072_v11  ;;  %vm374_vm0 = vcmp.eq.s32.totalorder %v246_v47, %v3076_v13  ;;  %v5672_v63 = vmov 0 }
  0x31   : > { %v5661_v52 = vsel %vm3326_vm14, 4294967295, %v5660_v52  ;;  %2311 = vmatprep.subr.msk.bf16.mxu1 %vm3326_vm14, %v3021_v15  ;;  %vm3337_vm13 = vmpackc.low %vm368_vm3, %vm364_vm8  ;;  %vm372_vm8 = vcmp.eq.s32.totalorder %v246_v47, %v3074_v12  ;;  %vm376_vm3 = vcmp.eq.s32.totalorder %v247_v48, %v3074_v12  ;;  %v5674_v0 = vmov 0 }
  0x32   : > { %v5663_v55 = vsel %vm3337_vm13, 4294967295, %v5662_v55  ;;  %2185 = vmatpush1.bf16.msk.msra.mxu0 %vm3337_vm13, %v3021_v15  ;;  %vm3353_vm5 = vmpackc.low %vm370_vm10, %vm366_vm7  ;;  %vm378_vm13 = vcmp.eq.s32.totalorder %v247_v48, %v3076_v13  ;;  %vm381_vm10 = vcmp.eq.s32.totalorder %v248_v53, %v3070_v10  ;;  %v1214_v2 = vcombine.high %v3380_v61, %v3380_v61 }
  0x33   : > { %v5665_v56 = vsel %vm3353_vm5, 4294967295, %v5664_v56  ;;  %2313 = vmatpush1.bf16.msk.msra.mxu1 %vm3353_vm5, %v3021_v15  ;;  %vm3362_vm14 = vmpackc.low %vm377_vm2, %vm373_vm6  ;;  %vm385_vm5 = vcmp.eq.s32.totalorder %v249_v54, %v3070_v10  ;;  %vm383_vm6 = vcmp.eq.s32.totalorder %v248_v53, %v3072_v11  ;;  %v5676_v3 = vmov 0 }
  0x34   : > { %v5667_v57 = vsel %vm3362_vm14, 4294967295, %v5666_v57  ;;  %2187 = vmatprep.subr.msk.bf16.mxu0 %vm3362_vm14, %v3021_v15  ;;  %vm3371_vm7 = vmpackc.low %vm379_vm1, %vm375_vm11  ;;  %vm387_vm11 = vcmp.eq.s32.totalorder %v249_v54, %v3072_v11  ;;  %vm380_vm14 = vcmp.eq.s32.totalorder %v248_v53, %v3074_v12  ;;  %v252_v4 = vadd.s32 160, %v3057_v1 }
  0x35   : > { %v5669_v58 = vsel %vm3371_vm7, 4294967295, %v5668_v58  ;;  %2315 = vmatprep.subr.msk.bf16.mxu1 %vm3371_vm7, %v3021_v15  ;;  %vm3385_vm2 = vmpackc.low %vm376_vm3, %vm372_vm8  ;;  %vm384_vm7 = vcmp.eq.s32.totalorder %v249_v54, %v3074_v12  ;;  %vm382_vm3 = vcmp.eq.s32.totalorder %v248_v53, %v3076_v13  ;;  %v253_v5 = vadd.s32 168, %v3057_v1 }
  0x36   : > { %v5671_v62 = vsel %vm3385_vm2, 4294967295, %v5670_v62  ;;  %2189 = vmatpush1.bf16.msk.msra.mxu0 %vm3385_vm2, %v3021_v15  ;;  %vm3394_vm1 = vmpackc.low %vm378_vm13, %vm374_vm0  ;;  %vm386_vm2 = vcmp.eq.s32.totalorder %v249_v54, %v3076_v13  ;;  %vm389_vm13 = vcmp.eq.s32.totalorder %v250_v59, %v3070_v10  ;;  %v5678_v6 = vmov 0 }
  0x37   : > { %v5673_v63 = vsel %vm3394_vm1, 4294967295, %v5672_v63  ;;  %2317 = vmatpush1.bf16.msk.msra.mxu1 %vm3394_vm1, %v3021_v15  ;;  %vm3403_vm8 = vmpackc.low %vm385_vm5, %vm381_vm10  ;;  %vm393_vm5 = vcmp.eq.s32.totalorder %v251_v60, %v3070_v10  ;;  %v5680_v7 = vmov 0  ;;  %vm388_vm1 = vcmp.eq.s32.totalorder %v250_v59, %v3074_v12 }
  0x38   : > { %v5675_v0 = vsel %vm3403_vm8, 4294967295, %v5674_v0  ;;  %2191 = vmatprep.subr.msk.bf16.mxu0 %vm3403_vm8, %v3021_v15  ;;  %vm3414_vm0 = vmpackc.low %vm387_vm11, %vm383_vm6  ;;  %vm391_vm6 = vcmp.eq.s32.totalorder %v250_v59, %v3072_v11  ;;  %vm395_vm11 = vcmp.eq.s32.totalorder %v251_v60, %v3072_v11  ;;  %v5682_v8 = vmov 0 }
  0x39   : > { %v5677_v3 = vsel %vm3414_vm0, 4294967295, %v5676_v3  ;;  %2319 = vmatprep.subr.msk.bf16.mxu1 %vm3414_vm0, %v3021_v15  ;;  %vm3425_vm10 = vmpackc.low %vm384_vm7, %vm380_vm14  ;;  %vm392_vm0 = vcmp.eq.s32.totalorder %v251_v60, %v3074_v12  ;;  %vm390_vm7 = vcmp.eq.s32.totalorder %v250_v59, %v3076_v13  ;;  %v3451_v9 = vpack.c.bf16 %v3380_v61, %v3380_v61 }
  0x3a   : > { %v5679_v6 = vsel %vm3425_vm10, 4294967295, %v5678_v6  ;;  %2193 = vmatpush1.bf16.msk.msra.mxu0 %vm3425_vm10, %v3021_v15  ;;  %vm3434_vm8 = vmpackc.low %vm386_vm2, %vm382_vm3  ;;  %vm394_vm10 = vcmp.eq.s32.totalorder %v251_v60, %v3076_v13  ;;  %v3453_v17 = vpack.c.bf16 %v1214_v2, %v1214_v2  ;;  %v5685_v18 = vmov 0 }
  0x3b   : > { %v5681_v7 = vsel %vm3434_vm8, 4294967295, %v5680_v7  ;;  %2321 = vmatpush1.bf16.msk.msra.mxu1 %vm3434_vm8, %v3021_v15  ;;  %vm3443_vm14 = vmpackc.low %vm393_vm5, %vm389_vm13  ;;  %5684 = vst [vmem:[#allocation3_spill] sm:$0xff] %v3451_v9  ;;  %vm401_vm13 = vcmp.eq.s32.totalorder %v253_v5, %v3070_v10  ;;  %v254_v23 = vadd.s32 176, %v3057_v1  ;;  %v255_v24 = vadd.s32 184, %v3057_v1 }
  0x3c   : > { %v5683_v8 = vsel %vm3443_vm14, 4294967295, %v5682_v8  ;;  %2195 = vmatprep.subr.msk.bf16.mxu0 %vm3443_vm14, %v3021_v15  ;;  %vm3458_vm2 = vmpackc.low %vm395_vm11, %vm391_vm6  ;;  %v5687_v29 = vmov 0  ;;  %vm399_vm6 = vcmp.eq.s32.totalorder %v252_v4, %v3072_v11  ;;  %vm403_vm11 = vcmp.eq.s32.totalorder %v253_v5, %v3072_v11 }
  0x3d   : > { %v5686_v18 = vsel %vm3458_vm2, 4294967295, %v5685_v18  ;;  %2323 = vmatprep.subr.msk.bf16.mxu1 %vm3458_vm2, %v3021_v15  ;;  %vm3471_vm5 = vmpackc.low %vm392_vm0, %vm388_vm1  ;;  %v1222_v30 = vunpack.c.l.bf16 %v3451_v9  ;;  %v1223_v35 = vunpack.c.l.bf16 %v3453_v17  ;;  %v5689_v36 = vmov 0 }
  0x3e   : > { %v5688_v29 = vsel %vm3471_vm5, 4294967295, %v5687_v29  ;;  %2197 = vmatpush1.bf16.msk.msra.mxu0 %vm3471_vm5, %v3021_v15  ;;  %vm3486_vm1 = vmpackc.low %vm394_vm10, %vm390_vm7  ;;  %vm396_vm0 = vcmp.eq.s32.totalorder %v252_v4, %v3074_v12  ;;  %vm400_vm3 = vcmp.eq.s32.totalorder %v253_v5, %v3074_v12  ;;  %vm5692_vm2 = vcmp.eq.s32.totalorder %v252_v4, %v3070_v10 }
  0x3f   : > { %v5690_v36 = vsel %vm3486_vm1, 4294967295, %v5689_v36  ;;  %2325 = vmatpush1.bf16.msk.msra.mxu1 %vm3486_vm1, %v3021_v15  ;;  %vm3497_vm14 = vmpackc.low %vm401_vm13, %vm5692_vm2  ;;  %v5693_v41 = vmov 0  ;;  %vm398_vm5 = vcmp.eq.s32.totalorder %v252_v4, %v3076_v13  ;;  %vm402_vm10 = vcmp.eq.s32.totalorder %v253_v5, %v3076_v13 }
  0x40   : > { %5691 = vst [vmem:[#allocation4_spill] sm:$0xff] %v5690_v36  ;;  %v5694_v41 = vsel %vm3497_vm14, 4294967295, %v5693_v41  ;;  %v1230_v42 = vcombine.low %v1222_v30, %v1223_v35  ;;  %2199 = vmatprep.subr.msk.bf16.mxu0 %vm3497_vm14, %v3021_v15  ;;  %vm3506_vm7 = vmpackc.low %vm403_vm11, %vm399_vm6  ;;  %v5696_v47 = vmov 0  ;;  %vm405_vm1 = vcmp.eq.s32.totalorder %v254_v23, %v3070_v10 }
  0x41   : > { %5695 = vst [vmem:[#allocation5_spill] sm:$0xff] %v5694_v41  ;;  %v5697_v47 = vsel %vm3506_vm7, 4294967295, %v5696_v47  ;;  %vm409_vm2 = vcmp.eq.s32.totalorder %v255_v24, %v3070_v10  ;;  %v256_v48 = vadd.s32 192, %v3057_v1  ;;  %v257_v53 = vadd.s32 200, %v3057_v1  ;;  %2327 = vmatprep.subr.msk.bf16.mxu1 %vm3506_vm7, %v3021_v15  ;;  %vm3517_vm13 = vmpackc.low %vm400_vm3, %vm396_vm0 }
  0x42   : > { %5698 = vst [vmem:[#allocation6_spill] sm:$0xff] %v5697_v47  ;;  %v5699_v54 = vmov 0  ;;  %vm407_vm6 = vcmp.eq.s32.totalorder %v254_v23, %v3072_v11  ;;  %vm411_vm11 = vcmp.eq.s32.totalorder %v255_v24, %v3072_v11  ;;  %v3524_v59 = vsub.f32 %v3380_v61, %v1230_v42  ;;  %2201 = vmatpush1.bf16.msk.msra.mxu0 %vm3517_vm13, %v3021_v15  ;;  %vm3531_vm14 = vmpackc.low %vm402_vm10, %vm398_vm5 }
  0x43   : > { %v5700_v54 = vsel %vm3517_vm13, 4294967295, %v5699_v54  ;;  %v5703_v60 = vmov 0  ;;  %vm404_vm3 = vcmp.eq.s32.totalorder %v254_v23, %v3074_v12  ;;  %vm408_vm0 = vcmp.eq.s32.totalorder %v255_v24, %v3074_v12  ;;  %2329 = vmatpush1.bf16.msk.msra.mxu1 %vm3531_vm14, %v3021_v15  ;;  %vm3540_vm7 = vmpackc.low %vm409_vm2, %vm405_vm1 }
  0x44   : > { %5701 = vst [vmem:[#allocation7_spill] sm:$0xff] %v5700_v54  ;;  %5702 = vst [vmem:[#allocation8_spill] sm:$0xff] %v3524_v59  ;;  %v5704_v60 = vsel %vm3531_vm14, 4294967295, %v5703_v60  ;;  %v5706_v61 = vmov 0  ;;  %vm406_vm13 = vcmp.eq.s32.totalorder %v254_v23, %v3076_v13  ;;  %vm410_vm8 = vcmp.eq.s32.totalorder %v255_v24, %v3076_v13  ;;  %2203 = vmatprep.subr.msk.bf16.mxu0 %vm3540_vm7, %v3021_v15 }
  0x45   : > { %5705 = vst [vmem:[#allocation9_spill] sm:$0xff] %v5704_v60  ;;  %v5707_v61 = vsel %vm3540_vm7, 4294967295, %v5706_v61  ;;  %v1238_v2 = vcombine.high %v3524_v59, %v3524_v59  ;;  %vm3551_vm5 = vmpackc.low %vm411_vm11, %vm407_vm6  ;;  %v5709_v4 = vmov 0  ;;  %vm413_vm1 = vcmp.eq.s32.totalorder %v256_v48, %v3070_v10 }
  0x46   : > { %5708 = vst [vmem:[#allocation10_spill] sm:$0xff] %v5707_v61  ;;  %v5710_v4 = vsel %vm3551_vm5, 4294967295, %v5709_v4  ;;  %vm417_vm10 = vcmp.eq.s32.totalorder %v257_v53, %v3070_v10  ;;  %v258_v5 = vadd.s32 208, %v3057_v1  ;;  %v259_v30 = vadd.s32 216, %v3057_v1  ;;  %2331 = vmatprep.subr.msk.bf16.mxu1 %vm3551_vm5, %v3021_v15  ;;  %vm3562_vm2 = vmpackc.low %vm408_vm0, %vm404_vm3 }
  0x47   : > { %5711 = vst [vmem:[#allocation11_spill] sm:$0xff] %v5710_v4  ;;  %v5712_v24 = vmov 0  ;;  %vm415_vm6 = vcmp.eq.s32.totalorder %v256_v48, %v3072_v11  ;;  %vm419_vm11 = vcmp.eq.s32.totalorder %v257_v53, %v3072_v11  ;;  %v3568_v35 = vpack.c.bf16 %v1238_v2, %v1238_v2  ;;  %2205 = vmatpush1.bf16.msk.msra.mxu0 %vm3562_vm2, %v3021_v15  ;;  %vm3575_vm7 = vmpackc.low %vm410_vm8, %vm406_vm13  ;;  %v6190_v14 = vld [vmem:[#allocation4_spill] sm:$0xff] }
  0x48   : > { %v5713_v24 = vsel %vm3562_vm2, 4294967295, %v5712_v24  ;;  %v5716_v42 = vmov 0  ;;  %vm412_vm3 = vcmp.eq.s32.totalorder %v256_v48, %v3074_v12  ;;  %vm416_vm0 = vcmp.eq.s32.totalorder %v257_v53, %v3074_v12  ;;  %2333 = vmatpush1.bf16.msk.msra.mxu1 %vm3575_vm7, %v3021_v15  ;;  %vm3584_vm5 = vmpackc.low %vm417_vm10, %vm413_vm1  ;;  %v6192_v16 = vld [vmem:[#allocation5_spill] sm:$0xff] }
  0x49   : > { %5714 = vst [vmem:[#allocation12_spill] sm:$0xff] %v5713_v24  ;;  %5715 = vst [vmem:[#allocation13_spill] sm:$0xff] %v3568_v35  ;;  %v5717_v42 = vsel %vm3575_vm7, 4294967295, %v5716_v42  ;;  %v5719_v2 = vmov 0  ;;  %vm414_vm2 = vcmp.eq.s32.totalorder %v256_v48, %v3076_v13  ;;  %vm418_vm14 = vcmp.eq.s32.totalorder %v257_v53, %v3076_v13  ;;  %1302 = vmatprep.mubr.bf16.mxu0 %v3568_v35  ;;  %2207 = vmatprep.subr.msk.bf16.mxu0 %vm3584_vm5, %v3021_v15  ;;  %v6194_v19 = vld [vmem:[#allocation6_spill] sm:$0xff] }
  0x4a   : > { %5718 = vst [vmem:[#allocation14_spill] sm:$0xff] %v5717_v42  ;;  %v5720_v2 = vsel %vm3584_vm5, 4294967295, %v5719_v2  ;;  %vm3594_vm8 = vmpackc.low %vm419_vm11, %vm415_vm6  ;;  %v5722_v23 = vmov 0  ;;  %vm421_vm13 = vcmp.eq.s32.totalorder %v258_v5, %v3070_v10  ;;  %vm425_vm1 = vcmp.eq.s32.totalorder %v259_v30, %v3070_v10  ;;  %1384 = vmatprep.mubr.bf16.mxu1 %v3568_v35 }
  0x4b   : > { %5721 = vst [vmem:[#allocation15_spill] sm:$0xff] %v5720_v2  ;;  %v5723_v23 = vsel %vm3594_vm8, 4294967295, %v5722_v23  ;;  %v260_v9 = vadd.s32 224, %v3057_v1  ;;  %v261_v42 = vadd.s32 232, %v3057_v1  ;;  %2335 = vmatprep.subr.msk.bf16.mxu1 %vm3594_vm8, %v3021_v15  ;;  %vm3608_vm10 = vmpackc.low %vm416_vm0, %vm412_vm3  ;;  %v5725_v53 = vmov 0  ;;  %v6196_v20 = vld [vmem:[#allocation7_spill] sm:$0xff] }
  0x4c   : > { %5724 = vst [vmem:[#allocation16_spill] sm:$0xff] %v5723_v23  ;;  %v5726_v53 = vsel %vm3608_vm10, 4294967295, %v5725_v53  ;;  %vm423_vm6 = vcmp.eq.s32.totalorder %v258_v5, %v3072_v11  ;;  %vm427_vm11 = vcmp.eq.s32.totalorder %v259_v30, %v3072_v11  ;;  %2209 = vmatpush1.bf16.msk.msra.mxu0 %vm3608_vm10, %v3021_v15  ;;  %vm3619_vm5 = vmpackc.low %vm418_vm14, %vm414_vm2  ;;  %v5728_v35 = vmov 0 }
  0x4d   : > { %5727 = vst [vmem:[#allocation17_spill] sm:$0xff] %v5726_v53  ;;  %v5729_v35 = vsel %vm3619_vm5, 4294967295, %v5728_v35  ;;  %vm420_vm8 = vcmp.eq.s32.totalorder %v258_v5, %v3074_v12  ;;  %vm424_vm3 = vcmp.eq.s32.totalorder %v259_v30, %v3074_v12  ;;  %2337 = vmatpush1.bf16.msk.msra.mxu1 %vm3619_vm5, %v3021_v15  ;;  %vm3628_vm0 = vmpackc.low %vm425_vm1, %vm421_vm13  ;;  %v5731_v23 = vmov 0 }
  0x4e   : > { %5730 = vst [vmem:[#allocation18_spill] sm:$0xff] %v5729_v35  ;;  %v5732_v23 = vsel %vm3628_vm0, 4294967295, %v5731_v23  ;;  %vm422_vm10 = vcmp.eq.s32.totalorder %v258_v5, %v3076_v13  ;;  %vm426_vm7 = vcmp.eq.s32.totalorder %v259_v30, %v3076_v13  ;;  %2211 = vmatprep.subr.msk.bf16.mxu0 %vm3628_vm0, %v3021_v15  ;;  %vm3637_vm14 = vmpackc.low %vm427_vm11, %vm423_vm6  ;;  %v5734_v48 = vmov 0 }
  0x4f   : > { %5733 = vst [vmem:[#allocation19_spill] sm:$0xff] %v5732_v23  ;;  %v5735_v48 = vsel %vm3637_vm14, 4294967295, %v5734_v48  ;;  %vm429_vm2 = vcmp.eq.s32.totalorder %v260_v9, %v3070_v10  ;;  %vm433_vm5 = vcmp.eq.s32.totalorder %v261_v42, %v3070_v10  ;;  %v262_v35 = vadd.s32 240, %v3057_v1  ;;  %2339 = vmatprep.subr.msk.bf16.mxu1 %vm3637_vm14, %v3021_v15  ;;  %vm3648_vm13 = vmpackc.low %vm424_vm3, %vm420_vm8 }
  0x50   : > { %5736 = vst [vmem:[#allocation20_spill] sm:$0xff] %v5735_v48  ;;  %v263_v53 = vadd.s32 248, %v3057_v1  ;;  %v5737_v5 = vmov 0  ;;  %vm431_vm1 = vcmp.eq.s32.totalorder %v260_v9, %v3072_v11  ;;  %vm435_vm6 = vcmp.eq.s32.totalorder %v261_v42, %v3072_v11  ;;  %2213 = vmatpush1.bf16.msk.msra.mxu0 %vm3648_vm13, %v3021_v15  ;;  %vm3657_vm11 = vmpackc.low %vm426_vm7, %vm422_vm10 }
  0x51   : > { %v5738_v5 = vsel %vm3648_vm13, 4294967295, %v5737_v5  ;;  %v5740_v30 = vmov 0  ;;  %vm428_vm0 = vcmp.eq.s32.totalorder %v260_v9, %v3074_v12  ;;  %vm432_vm14 = vcmp.eq.s32.totalorder %v261_v42, %v3074_v12  ;;  %2341 = vmatpush1.bf16.msk.msra.mxu1 %vm3657_vm11, %v3021_v15  ;;  %vm3666_vm8 = vmpackc.low %vm433_vm5, %vm429_vm2 }
  0x52   : > { %5739 = vst [vmem:[#allocation21_spill] sm:$0xff] %v5738_v5  ;;  %v5741_v30 = vsel %vm3657_vm11, 4294967295, %v5740_v30  ;;  %v5743_v48 = vmov 0  ;;  %vm430_vm3 = vcmp.eq.s32.totalorder %v260_v9, %v3076_v13  ;;  %vm434_vm13 = vcmp.eq.s32.totalorder %v261_v42, %v3076_v13  ;;  %2215 = vmatprep.subr.msk.bf16.mxu0 %vm3666_vm8, %v3021_v15  ;;  %vm3675_vm7 = vmpackc.low %vm435_vm6, %vm431_vm1 }
  0x53   : > { %5742 = vst [vmem:[#allocation22_spill] sm:$0xff] %v5741_v30  ;;  %v5744_v48 = vsel %vm3666_vm8, 4294967295, %v5743_v48  ;;  %v5746_v5 = vmov 0  ;;  %vm437_vm10 = vcmp.eq.s32.totalorder %v262_v35, %v3070_v10  ;;  %vm441_vm11 = vcmp.eq.s32.totalorder %v263_v53, %v3070_v10  ;;  %2343 = vmatprep.subr.msk.bf16.mxu1 %vm3675_vm7, %v3021_v15  ;;  %vm3686_vm5 = vmpackc.low %vm432_vm14, %vm428_vm0 }
  0x54   : > { %5745 = vst [vmem:[#allocation23_spill] sm:$0xff] %v5744_v48  ;;  %v5747_v5 = vsel %vm3675_vm7, 4294967295, %v5746_v5  ;;  %v264_v30 = vadd.s32 256, %v3057_v1  ;;  %v265_v23 = vadd.s32 264, %v3057_v1  ;;  %v5749_v9 = vmov 0  ;;  %2217 = vmatpush1.bf16.msk.msra.mxu0 %vm3686_vm5, %v3021_v15  ;;  %vm3695_vm6 = vmpackc.low %vm434_vm13, %vm430_vm3 }
  0x55   : > { %5748 = vst [vmem:[#allocation24_spill] sm:$0xff] %v5747_v5  ;;  %v5750_v9 = vsel %vm3686_vm5, 4294967295, %v5749_v9  ;;  %vm439_vm2 = vcmp.eq.s32.totalorder %v262_v35, %v3072_v11  ;;  %vm443_vm1 = vcmp.eq.s32.totalorder %v263_v53, %v3072_v11  ;;  %v5752_v42 = vmov 0  ;;  %2345 = vmatpush1.bf16.msk.msra.mxu1 %vm3695_vm6, %v3021_v15  ;;  %vm3704_vm0 = vmpackc.low %vm441_vm11, %vm437_vm10 }
  0x56   : > { %5751 = vst [vmem:[#allocation25_spill] sm:$0xff] %v5750_v9  ;;  %v5753_v42 = vsel %vm3695_vm6, 4294967295, %v5752_v42  ;;  %vm436_vm8 = vcmp.eq.s32.totalorder %v262_v35, %v3074_v12  ;;  %vm440_vm7 = vcmp.eq.s32.totalorder %v263_v53, %v3074_v12  ;;  %v5755_v5 = vmov 0  ;;  %2219 = vmatprep.subr.msk.bf16.mxu0 %vm3704_vm0, %v3021_v15  ;;  %vm3713_vm13 = vmpackc.low %vm443_vm1, %vm439_vm2 }
  0x57   : > { %5754 = vst [vmem:[#allocation26_spill] sm:$0xff] %v5753_v42  ;;  %v5756_v5 = vsel %vm3704_vm0, 4294967295, %v5755_v5  ;;  %vm438_vm14 = vcmp.eq.s32.totalorder %v262_v35, %v3076_v13  ;;  %vm442_vm5 = vcmp.eq.s32.totalorder %v263_v53, %v3076_v13  ;;  %v5758_v9 = vmov 0  ;;  %2347 = vmatprep.subr.msk.bf16.mxu1 %vm3713_vm13, %v3021_v15  ;;  %vm3724_vm11 = vmpackc.low %vm440_vm7, %vm436_vm8 }
  0x58   : > { %5757 = vst [vmem:[#allocation27_spill] sm:$0xff] %v5756_v5  ;;  %v5759_v9 = vsel %vm3713_vm13, 4294967295, %v5758_v9  ;;  %vm445_vm3 = vcmp.eq.s32.totalorder %v264_v30, %v3070_v10  ;;  %vm449_vm6 = vcmp.eq.s32.totalorder %v265_v23, %v3070_v10  ;;  %v266_v42 = vadd.s32 272, %v3057_v1  ;;  %2221 = vmatpush1.bf16.msk.msra.mxu0 %vm3724_vm11, %v3021_v15  ;;  %vm3737_vm1 = vmpackc.low %vm442_vm5, %vm438_vm14 }
  0x59   : > { %5760 = vst [vmem:[#allocation28_spill] sm:$0xff] %v5759_v9  ;;  %v267_v48 = vadd.s32 280, %v3057_v1  ;;  %v5761_v35 = vmov 0  ;;  %vm447_vm10 = vcmp.eq.s32.totalorder %v264_v30, %v3072_v11  ;;  %vm451_vm2 = vcmp.eq.s32.totalorder %v265_v23, %v3072_v11  ;;  %2349 = vmatpush1.bf16.msk.msra.mxu1 %vm3737_vm1, %v3021_v15  ;;  %vm3746_vm13 = vmpackc.low %vm449_vm6, %vm445_vm3 }
  0x5a   : > { %v5762_v35 = vsel %vm3724_vm11, 4294967295, %v5761_v35  ;;  %v3732_v53 = vpack.c.bf16 %v3524_v59, %v3524_v59  ;;  %v5765_v5 = vmov 0  ;;  %vm444_vm8 = vcmp.eq.s32.totalorder %v264_v30, %v3074_v12  ;;  %2223 = vmatprep.subr.msk.bf16.mxu0 %vm3746_vm13, %v3021_v15  ;;  %vm3755_vm5 = vmpackc.low %vm451_vm2, %vm447_vm10 }
  0x5b   : > { %5763 = vst [vmem:[#allocation29_spill] sm:$0xff] %v5762_v35  ;;  %v5766_v5 = vsel %vm3737_vm1, 4294967295, %v5765_v5  ;;  %vm448_vm7 = vcmp.eq.s32.totalorder %v265_v23, %v3074_v12  ;;  %v5768_v9 = vmov 0  ;;  %vm446_vm0 = vcmp.eq.s32.totalorder %v264_v30, %v3076_v13  ;;  %2351 = vmatprep.subr.msk.bf16.mxu1 %vm3755_vm5, %v3021_v15 }
  0x5c   : > { %5764 = vst [vmem:[#allocation30_spill] sm:$0xff] %v3732_v53  ;;  %5767 = vst [vmem:[#allocation31_spill] sm:$0xff] %v5766_v5  ;;  %v5769_v9 = vsel %vm3746_vm13, 4294967295, %v5768_v9  ;;  %vm450_vm11 = vcmp.eq.s32.totalorder %v265_v23, %v3076_v13  ;;  %v5771_v59 = vmov 0  ;;  %vm453_vm14 = vcmp.eq.s32.totalorder %v266_v42, %v3070_v10  ;;  %1303 = vmatmul.mubr.bf16.vlgmr.msra.gmra.mrb[0].mxu0 %v3732_v53  ;;  %1385 = vmatmul.mubr.bf16.vlgmr.msra.gmra.mrb[0].mxu1 %v3732_v53 }
  0x5d   : > { %5770 = vst [vmem:[#allocation32_spill] sm:$0xff] %v5769_v9  ;;  %v5772_v59 = vsel %vm3755_vm5, 4294967295, %v5771_v59  ;;  %vm457_vm1 = vcmp.eq.s32.totalorder %v267_v48, %v3070_v10  ;;  %v268_v5 = vadd.s32 288, %v3057_v1  ;;  %v269_v35 = vadd.s32 296, %v3057_v1  ;;  %vm3767_vm6 = vmpackc.low %vm448_vm7, %vm444_vm8 }
  0x5e   : > { %5773 = vst [vmem:[#allocation33_spill] sm:$0xff] %v5772_v59  ;;  %v5774_v23 = vmov 0  ;;  %vm455_vm3 = vcmp.eq.s32.totalorder %v266_v42, %v3072_v11  ;;  %vm459_vm10 = vcmp.eq.s32.totalorder %v267_v48, %v3072_v11  ;;  %2225 = vmatpush1.bf16.msk.msra.mxu0 %vm3767_vm6, %v3021_v15  ;;  %vm3779_vm2 = vmpackc.low %vm450_vm11, %vm446_vm0  ;;  %v5777_v59 = vmov 0 }
  0x5f   : > { %v5775_v23 = vsel %vm3767_vm6, 4294967295, %v5774_v23  ;;  %v5778_v59 = vsel %vm3779_vm2, 4294967295, %v5777_v59  ;;  %vm452_vm8 = vcmp.eq.s32.totalorder %v266_v42, %v3074_v12  ;;  %vm456_vm7 = vcmp.eq.s32.totalorder %v267_v48, %v3074_v12  ;;  %2353 = vmatpush1.bf16.msk.msra.mxu1 %vm3779_vm2, %v3021_v15  ;;  %vm3790_vm5 = vmpackc.low %vm457_vm1, %vm453_vm14 }
  0x60   : > { %5776 = vst [vmem:[#allocation34_spill] sm:$0xff] %v5775_v23  ;;  %5779 = vst [vmem:[#allocation35_spill] sm:$0xff] %v5778_v59  ;;  %v5780_v23 = vmov 0  ;;  %vm454_vm6 = vcmp.eq.s32.totalorder %v266_v42, %v3076_v13  ;;  %vm458_vm0 = vcmp.eq.s32.totalorder %v267_v48, %v3076_v13  ;;  %2227 = vmatprep.subr.msk.bf16.mxu0 %vm3790_vm5, %v3021_v15  ;;  %v5783_v30 = vmov 0 }
  0x61   : > { %v5781_v23 = vsel %vm3790_vm5, 4294967295, %v5780_v23  ;;  %vm3799_vm11 = vmpackc.low %vm459_vm10, %vm455_vm3  ;;  %vm461_vm2 = vcmp.eq.s32.totalorder %v268_v5, %v3070_v10  ;;  %vm465_vm1 = vcmp.eq.s32.totalorder %v269_v35, %v3070_v10  ;;  %v270_v59 = vadd.s32 304, %v3057_v1 }
  0x62   : > { %5782 = vst [vmem:[#allocation36_spill] sm:$0xff] %v5781_v23  ;;  %v5784_v30 = vsel %vm3799_vm11, 4294967295, %v5783_v30  ;;  %v271_v9 = vadd.s32 312, %v3057_v1  ;;  %2355 = vmatprep.subr.msk.bf16.mxu1 %vm3799_vm11, %v3021_v15  ;;  %vm3810_vm14 = vmpackc.low %vm456_vm7, %vm452_vm8  ;;  %v5786_v48 = vmov 0  ;;  %vm463_vm3 = vcmp.eq.s32.totalorder %v268_v5, %v3072_v11 }
  0x63   : > { %5785 = vst [vmem:[#allocation37_spill] sm:$0xff] %v5784_v30  ;;  %v5787_v48 = vsel %vm3810_vm14, 4294967295, %v5786_v48  ;;  %vm467_vm10 = vcmp.eq.s32.totalorder %v269_v35, %v3072_v11  ;;  %2229 = vmatpush1.bf16.msk.msra.mxu0 %vm3810_vm14, %v3021_v15  ;;  %vm3819_vm5 = vmpackc.low %vm458_vm0, %vm454_vm6  ;;  %v5789_v42 = vmov 0  ;;  %vm460_vm13 = vcmp.eq.s32.totalorder %v268_v5, %v3074_v12 }
  0x64   : > { %5788 = vst [vmem:[#allocation38_spill] sm:$0xff] %v5787_v48  ;;  %v5790_v42 = vsel %vm3819_vm5, 4294967295, %v5789_v42  ;;  %vm464_vm11 = vcmp.eq.s32.totalorder %v269_v35, %v3074_v12  ;;  %2357 = vmatpush1.bf16.msk.msra.mxu1 %vm3819_vm5, %v3021_v15  ;;  %vm3828_vm8 = vmpackc.low %vm465_vm1, %vm461_vm2  ;;  %v5792_v30 = vmov 0  ;;  %vm462_vm7 = vcmp.eq.s32.totalorder %v268_v5, %v3076_v13  ;;  %v3835_v48 = vld [vmem:[%s3348_s20 + $0x8] sm:$0xff] }
  0x65   : > { %5791 = vst [vmem:[#allocation39_spill] sm:$0xff] %v5790_v42  ;;  %v5793_v30 = vsel %vm3828_vm8, 4294967295, %v5792_v30  ;;  %vm466_vm14 = vcmp.eq.s32.totalorder %v269_v35, %v3076_v13  ;;  %2231 = vmatprep.subr.msk.bf16.mxu0 %vm3828_vm8, %v3021_v15  ;;  %vm3840_vm6 = vmpackc.low %vm467_vm10, %vm463_vm3  ;;  %v5795_v23 = vmov 0  ;;  %vm469_vm0 = vcmp.eq.s32.totalorder %v270_v59, %v3070_v10 }
  0x66   : > { %5794 = vst [vmem:[#allocation40_spill] sm:$0xff] %v5793_v30  ;;  %v5796_v23 = vsel %vm3840_vm6, 4294967295, %v5795_v23  ;;  %vm473_vm2 = vcmp.eq.s32.totalorder %v271_v9, %v3070_v10  ;;  %v272_v42 = vadd.s32 320, %v3057_v1  ;;  %v273_v5 = vadd.s32 328, %v3057_v1  ;;  %2359 = vmatprep.subr.msk.bf16.mxu1 %vm3840_vm6, %v3021_v15  ;;  %vm3851_vm1 = vmpackc.low %vm464_vm11, %vm460_vm13 }
  0x67   : > { %5797 = vst [vmem:[#allocation41_spill] sm:$0xff] %v5796_v23  ;;  %v5798_v35 = vmov 0  ;;  %vm471_vm3 = vcmp.eq.s32.totalorder %v270_v59, %v3072_v11  ;;  %vm475_vm10 = vcmp.eq.s32.totalorder %v271_v9, %v3072_v11  ;;  %2233 = vmatpush1.bf16.msk.msra.mxu0 %vm3851_vm1, %v3021_v15  ;;  %vm3860_vm8 = vmpackc.low %vm466_vm14, %vm462_vm7  ;;  %v5801_v30 = vmov 0 }
  0x68   : > { %v5799_v35 = vsel %vm3851_vm1, 4294967295, %v5798_v35  ;;  %v5802_v30 = vsel %vm3860_vm8, 4294967295, %v5801_v30  ;;  %vm468_vm5 = vcmp.eq.s32.totalorder %v270_v59, %v3074_v12  ;;  %vm472_vm6 = vcmp.eq.s32.totalorder %v271_v9, %v3074_v12  ;;  %2361 = vmatpush1.bf16.msk.msra.mxu1 %vm3860_vm8, %v3021_v15  ;;  %vm3871_vm13 = vmpackc.low %vm473_vm2, %vm469_vm0 }
  0x69   : > { %5800 = vst [vmem:[#allocation42_spill] sm:$0xff] %v5799_v35  ;;  %5803 = vst [vmem:[#allocation43_spill] sm:$0xff] %v5802_v30  ;;  %v1215_v23 = vcombine.high %v3835_v48, %v3835_v48  ;;  %v5804_v53 = vmov 0  ;;  %vm470_vm11 = vcmp.eq.s32.totalorder %v270_v59, %v3076_v13  ;;  %vm474_vm14 = vcmp.eq.s32.totalorder %v271_v9, %v3076_v13  ;;  %2235 = vmatprep.subr.msk.bf16.mxu0 %vm3871_vm13, %v3021_v15 }
  0x6a   : > { %v5805_v53 = vsel %vm3871_vm13, 4294967295, %v5804_v53  ;;  %v274_v35 = vadd.s32 336, %v3057_v1  ;;  %vm3881_vm7 = vmpackc.low %vm475_vm10, %vm471_vm3  ;;  %v5807_v2 = vmov 0  ;;  %vm477_vm8 = vcmp.eq.s32.totalorder %v272_v42, %v3070_v10 }
  0x6b   : > { %5806 = vst [vmem:[#allocation44_spill] sm:$0xff] %v5805_v53  ;;  %v5808_v2 = vsel %vm3881_vm7, 4294967295, %v5807_v2  ;;  %vm481_vm0 = vcmp.eq.s32.totalorder %v273_v5, %v3070_v10  ;;  %v275_v30 = vadd.s32 344, %v3057_v1  ;;  %2363 = vmatprep.subr.msk.bf16.mxu1 %vm3881_vm7, %v3021_v15  ;;  %vm3891_vm2 = vmpackc.low %vm472_vm6, %vm468_vm5  ;;  %v5810_v59 = vmov 0 }
  0x6c   : > { %5809 = vst [vmem:[#allocation45_spill] sm:$0xff] %v5808_v2  ;;  %v5811_v59 = vsel %vm3891_vm2, 4294967295, %v5810_v59  ;;  %vm479_vm13 = vcmp.eq.s32.totalorder %v272_v42, %v3072_v11  ;;  %vm483_vm3 = vcmp.eq.s32.totalorder %v273_v5, %v3072_v11  ;;  %2237 = vmatpush1.bf16.msk.msra.mxu0 %vm3891_vm2, %v3021_v15  ;;  %vm3900_vm10 = vmpackc.low %vm474_vm14, %vm470_vm11  ;;  %v5813_v9 = vmov 0 }
  0x6d   : > { %5812 = vst [vmem:[#allocation46_spill] sm:$0xff] %v5811_v59  ;;  %v5814_v9 = vsel %vm3900_vm10, 4294967295, %v5813_v9  ;;  %vm476_vm1 = vcmp.eq.s32.totalorder %v272_v42, %v3074_v12  ;;  %v3908_v2 = vpack.c.bf16 %v3835_v48, %v3835_v48  ;;  %v3910_v53 = vpack.c.bf16 %v1215_v23, %v1215_v23  ;;  %2365 = vmatpush1.bf16.msk.msra.mxu1 %vm3900_vm10, %v3021_v15  ;;  %vm3915_vm5 = vmpackc.low %vm481_vm0, %vm477_vm8 }
  0x6e   : > { %5815 = vst [vmem:[#allocation47_spill] sm:$0xff] %v5814_v9  ;;  %v5817_v59 = vmov 0  ;;  %vm478_vm6 = vcmp.eq.s32.totalorder %v272_v42, %v3076_v13  ;;  %vm482_vm11 = vcmp.eq.s32.totalorder %v273_v5, %v3076_v13  ;;  %v276_v24 = vadd.s32 352, %v3057_v1  ;;  %2239 = vmatprep.subr.msk.bf16.mxu0 %vm3915_vm5, %v3021_v15  ;;  %vm3928_vm7 = vmpackc.low %vm483_vm3, %vm479_vm13 }
  0x6f   : > { %5816 = vst [vmem:[#allocation48_spill] sm:$0xff] %v3908_v2  ;;  %v5818_v59 = vsel %vm3915_vm5, 4294967295, %v5817_v59  ;;  %v5820_v23 = vmov 0  ;;  %vm489_vm8 = vcmp.eq.s32.totalorder %v275_v30, %v3070_v10  ;;  %v277_v9 = vadd.s32 360, %v3057_v1  ;;  %2367 = vmatprep.subr.msk.bf16.mxu1 %vm3928_vm7, %v3021_v15  ;;  %vm3954_vm5 = vmpackc.low %vm482_vm11, %vm478_vm6 }
  0x70   : > { %5819 = vst [vmem:[#allocation49_spill] sm:$0xff] %v5818_v59  ;;  %v5821_v23 = vsel %vm3928_vm7, 4294967295, %v5820_v23  ;;  %v1224_v4 = vunpack.c.l.bf16 %v3908_v2  ;;  %v1225_v61 = vunpack.c.l.bf16 %v3910_v53  ;;  %vm5823_vm0 = vcmp.eq.s32.totalorder %v273_v5, %v3074_v12 }
  0x71   : > { %5822 = vst [vmem:[#allocation50_spill] sm:$0xff] %v5821_v23  ;;  %vm3943_vm13 = vmpackc.low %vm5823_vm0, %vm476_vm1  ;;  %v5824_v59 = vmov 0  ;;  %vm487_vm3 = vcmp.eq.s32.totalorder %v274_v35, %v3072_v11  ;;  %vm491_vm14 = vcmp.eq.s32.totalorder %v275_v30, %v3072_v11  ;;  %v5827_v2 = vmov 0  ;;  %2369 = vmatpush1.bf16.msk.msra.mxu1 %vm3954_vm5, %v3021_v15 }
  0x72   : > { %v5825_v59 = vsel %vm3943_vm13, 4294967295, %v5824_v59  ;;  %2241 = vmatpush1.bf16.msk.msra.mxu0 %vm3943_vm13, %v3021_v15  ;;  %v5828_v2 = vsel %vm3954_vm5, 4294967295, %v5827_v2  ;;  %vm488_vm1 = vcmp.eq.s32.totalorder %v275_v30, %v3074_v12  ;;  %v1231_v5 = vcombine.low %v1224_v4, %v1225_v61  ;;  %vm3975_vm7 = vmpackc.low %vm491_vm14, %vm487_vm3 }
  0x73   : > { %5826 = vst [vmem:[#allocation51_spill] sm:$0xff] %v5825_v59  ;;  %5829 = vst [vmem:[#allocation52_spill] sm:$0xff] %v5828_v2  ;;  %vm5830_vm0 = vcmp.eq.s32.totalorder %v274_v35, %v3070_v10  ;;  %v5831_v59 = vmov 0  ;;  %vm486_vm6 = vcmp.eq.s32.totalorder %v274_v35, %v3076_v13  ;;  %vm490_vm11 = vcmp.eq.s32.totalorder %v275_v30, %v3076_v13  ;;  %2371 = vmatprep.subr.msk.bf16.mxu1 %vm3975_vm7, %v3021_v15 }
  0x74   : > { %vm3965_vm10 = vmpackc.low %vm489_vm8, %vm5830_vm0  ;;  %v5834_v61 = vmov 0  ;;  %vm497_vm5 = vcmp.eq.s32.totalorder %v277_v9, %v3070_v10  ;;  %v278_v4 = vadd.s32 368, %v3057_v1  ;;  %v279_v42 = vadd.s32 376, %v3057_v1 }
  0x75   : > { %v5832_v59 = vsel %vm3965_vm10, 4294967295, %v5831_v59  ;;  %2243 = vmatprep.subr.msk.bf16.mxu0 %vm3965_vm10, %v3021_v15  ;;  %v5835_v61 = vsel %vm3975_vm7, 4294967295, %v5834_v61  ;;  %v3983_v2 = vsub.f32 %v3835_v48, %v1231_v5  ;;  %vm5838_vm8 = vcmp.eq.s32.totalorder %v274_v35, %v3074_v12  ;;  %vm3999_vm13 = vmpackc.low %vm490_vm11, %vm486_vm6 }
  0x76   : > { %5833 = vst [vmem:[#allocation53_spill] sm:$0xff] %v5832_v59  ;;  %5836 = vst [vmem:[#allocation54_spill] sm:$0xff] %v5835_v61  ;;  %v5839_v30 = vmov 0  ;;  %vm495_vm14 = vcmp.eq.s32.totalorder %v276_v24, %v3072_v11  ;;  %vm499_vm3 = vcmp.eq.s32.totalorder %v277_v9, %v3072_v11  ;;  %v5842_v48 = vmov 0  ;;  %2373 = vmatpush1.bf16.msk.msra.mxu1 %vm3999_vm13, %v3021_v15 }
  0x77   : > { %5837 = vst [vmem:[#allocation55_spill] sm:$0xff] %v3983_v2  ;;  %vm3990_vm0 = vmpackc.low %vm488_vm1, %vm5838_vm8  ;;  %v5843_v48 = vsel %vm3999_vm13, 4294967295, %v5842_v48  ;;  %vm496_vm10 = vcmp.eq.s32.totalorder %v277_v9, %v3074_v12  ;;  %v1239_v35 = vcombine.high %v3983_v2, %v3983_v2  ;;  %vm5845_vm1 = vcmp.eq.s32.totalorder %v276_v24, %v3070_v10 }
  0x78   : > { %v5840_v30 = vsel %vm3990_vm0, 4294967295, %v5839_v30  ;;  %2245 = vmatpush1.bf16.msk.msra.mxu0 %vm3990_vm0, %v3021_v15  ;;  %5844 = vst [vmem:[#allocation57_spill] sm:$0xff] %v5843_v48  ;;  %vm4012_vm8 = vmpackc.low %vm497_vm5, %vm5845_vm1  ;;  %v5846_v5 = vmov 0  ;;  %vm494_vm6 = vcmp.eq.s32.totalorder %v276_v24, %v3076_v13  ;;  %vm498_vm11 = vcmp.eq.s32.totalorder %v277_v9, %v3076_v13 }
  0x79   : > { %5841 = vst [vmem:[#allocation56_spill] sm:$0xff] %v5840_v30  ;;  %v5847_v5 = vsel %vm4012_vm8, 4294967295, %v5846_v5  ;;  %v280_v30 = vadd.s32 384, %v3057_v1  ;;  %2247 = vmatprep.subr.msk.bf16.mxu0 %vm4012_vm8, %v3021_v15  ;;  %vm4022_vm7 = vmpackc.low %vm499_vm3, %vm495_vm14  ;;  %v5849_v61 = vmov 0  ;;  %vm501_vm13 = vcmp.eq.s32.totalorder %v278_v4, %v3070_v10 }
  0x7a   : > { %5848 = vst [vmem:[#allocation58_spill] sm:$0xff] %v5847_v5  ;;  %v5850_v61 = vsel %vm4022_vm7, 4294967295, %v5849_v61  ;;  %vm505_vm5 = vcmp.eq.s32.totalorder %v279_v42, %v3070_v10  ;;  %v281_v48 = vadd.s32 392, %v3057_v1  ;;  %v4029_v59 = vpack.c.bf16 %v1239_v35, %v1239_v35  ;;  %2375 = vmatprep.subr.msk.bf16.mxu1 %vm4022_vm7, %v3021_v15  ;;  %vm4045_vm8 = vmpackc.low %vm498_vm11, %vm494_vm6 }
  0x7b   : > { %5851 = vst [vmem:[#allocation59_spill] sm:$0xff] %v5850_v61  ;;  %vm5853_vm1 = vcmp.eq.s32.totalorder %v276_v24, %v3074_v12  ;;  %v5854_v9 = vmov 0  ;;  %vm503_vm14 = vcmp.eq.s32.totalorder %v278_v4, %v3072_v11  ;;  %vm507_vm3 = vcmp.eq.s32.totalorder %v279_v42, %v3072_v11  ;;  %2377 = vmatpush1.bf16.msk.msra.mxu1 %vm4045_vm8, %v3021_v15 }
  0x7c   : > { %5852 = vst [vmem:[#allocation60_spill] sm:$0xff] %v4029_v59  ;;  %vm4036_vm0 = vmpackc.low %vm496_vm10, %vm5853_vm1  ;;  %v5857_v35 = vmov 0  ;;  %vm504_vm2 = vcmp.eq.s32.totalorder %v279_v42, %v3074_v12  ;;  %1343 = vmatprep.mubr.bf16.mxu0 %v4029_v59  ;;  %v5860_v24 = vmov 0  ;;  %vm502_vm1 = vcmp.eq.s32.totalorder %v278_v4, %v3076_v13  ;;  %1425 = vmatprep.mubr.bf16.mxu1 %v4029_v59 }
  0x7d   : > { %v5855_v9 = vsel %vm4036_vm0, 4294967295, %v5854_v9  ;;  %2249 = vmatpush1.bf16.msk.msra.mxu0 %vm4036_vm0, %v3021_v15  ;;  %v5858_v35 = vsel %vm4045_vm8, 4294967295, %v5857_v35  ;;  %vm4055_vm10 = vmpackc.low %vm505_vm5, %vm501_vm13  ;;  %vm506_vm6 = vcmp.eq.s32.totalorder %v279_v42, %v3076_v13  ;;  %vm509_vm7 = vcmp.eq.s32.totalorder %v280_v30, %v3070_v10 }
  0x7e   : > { %5856 = vst [vmem:[#allocation61_spill] sm:$0xff] %v5855_v9  ;;  %5859 = vst [vmem:[#allocation62_spill] sm:$0xff] %v5858_v35  ;;  %v5861_v24 = vsel %vm4055_vm10, 4294967295, %v5860_v24  ;;  %2251 = vmatprep.subr.msk.bf16.mxu0 %vm4055_vm10, %v3021_v15  ;;  %v5863_v9 = vmov 0  ;;  %vm513_vm13 = vcmp.eq.s32.totalorder %v281_v48, %v3070_v10  ;;  %v282_v35 = vadd.s32 400, %v3057_v1 }
  0x7f   : > { %5862 = vst [vmem:[#allocation63_spill] sm:$0xff] %v5861_v24  ;;  %vm4065_vm11 = vmpackc.low %vm507_vm3, %vm503_vm14  ;;  %v283_v61 = vadd.s32 408, %v3057_v1  ;;  %vm5866_vm5 = vcmp.eq.s32.totalorder %v278_v4, %v3074_v12  ;;  %v5867_v42 = vmov 0  ;;  %vm511_vm14 = vcmp.eq.s32.totalorder %v280_v30, %v3072_v11 }
  0x80   : > { %v5864_v9 = vsel %vm4065_vm11, 4294967295, %v5863_v9  ;;  %2379 = vmatprep.subr.msk.bf16.mxu1 %vm4065_vm11, %v3021_v15  ;;  %vm4078_vm8 = vmpackc.low %vm504_vm2, %vm5866_vm5  ;;  %vm515_vm3 = vcmp.eq.s32.totalorder %v281_v48, %v3072_v11  ;;  %v5870_v59 = vmov 0  ;;  %vm508_vm11 = vcmp.eq.s32.totalorder %v280_v30, %v3074_v12 }
  0x81   : > { %5865 = vst [vmem:[#allocation64_spill] sm:$0xff] %v5864_v9  ;;  %v5868_v42 = vsel %vm4078_vm8, 4294967295, %v5867_v42  ;;  %2253 = vmatpush1.bf16.msk.msra.mxu0 %vm4078_vm8, %v3021_v15  ;;  %vm4087_vm10 = vmpackc.low %vm506_vm6, %vm502_vm1  ;;  %vm512_vm0 = vcmp.eq.s32.totalorder %v281_v48, %v3074_v12  ;;  %v5873_v4 = vmov 0  ;;  %vm510_vm5 = vcmp.eq.s32.totalorder %v280_v30, %v3076_v13 }
  0x82   : > { %5869 = vst [vmem:[#allocation65_spill] sm:$0xff] %v5868_v42  ;;  %v5871_v59 = vsel %vm4087_vm10, 4294967295, %v5870_v59  ;;  %2381 = vmatpush1.bf16.msk.msra.mxu1 %vm4087_vm10, %v3021_v15  ;;  %vm4096_vm2 = vmpackc.low %vm513_vm13, %vm509_vm7  ;;  %vm514_vm8 = vcmp.eq.s32.totalorder %v281_v48, %v3076_v13  ;;  %v5876_v42 = vmov 0  ;;  %vm517_vm6 = vcmp.eq.s32.totalorder %v282_v35, %v3070_v10 }
  0x83   : > { %5872 = vst [vmem:[#allocation66_spill] sm:$0xff] %v5871_v59  ;;  %v5874_v4 = vsel %vm4096_vm2, 4294967295, %v5873_v4  ;;  %2255 = vmatprep.subr.msk.bf16.mxu0 %vm4096_vm2, %v3021_v15  ;;  %vm4105_vm1 = vmpackc.low %vm515_vm3, %vm511_vm14  ;;  %vm521_vm10 = vcmp.eq.s32.totalorder %v283_v61, %v3070_v10  ;;  %v284_v59 = vadd.s32 416, %v3057_v1  ;;  %v285_v9 = vadd.s32 424, %v3057_v1 }
  0x84   : > { %5875 = vst [vmem:[#allocation67_spill] sm:$0xff] %v5874_v4  ;;  %v5877_v42 = vsel %vm4105_vm1, 4294967295, %v5876_v42  ;;  %2383 = vmatprep.subr.msk.bf16.mxu1 %vm4105_vm1, %v3021_v15  ;;  %vm4116_vm7 = vmpackc.low %vm512_vm0, %vm508_vm11  ;;  %v5879_v30 = vmov 0  ;;  %vm519_vm13 = vcmp.eq.s32.totalorder %v282_v35, %v3072_v11  ;;  %vm523_vm14 = vcmp.eq.s32.totalorder %v283_v61, %v3072_v11 }
  0x85   : > { %5878 = vst [vmem:[#allocation68_spill] sm:$0xff] %v5877_v42  ;;  %v5880_v30 = vsel %vm4116_vm7, 4294967295, %v5879_v30  ;;  %2257 = vmatpush1.bf16.msk.msra.mxu0 %vm4116_vm7, %v3021_v15  ;;  %vm4125_vm3 = vmpackc.low %vm514_vm8, %vm510_vm5  ;;  %v5882_v48 = vmov 0  ;;  %vm516_vm2 = vcmp.eq.s32.totalorder %v282_v35, %v3074_v12  ;;  %vm520_vm1 = vcmp.eq.s32.totalorder %v283_v61, %v3074_v12 }
  0x86   : > { %5881 = vst [vmem:[#allocation69_spill] sm:$0xff] %v5880_v30  ;;  %v5883_v48 = vsel %vm4125_vm3, 4294967295, %v5882_v48  ;;  %2385 = vmatpush1.bf16.msk.msra.mxu1 %vm4125_vm3, %v3021_v15  ;;  %vm4134_vm0 = vmpackc.low %vm521_vm10, %vm517_vm6  ;;  %v5885_v42 = vmov 0  ;;  %vm518_vm11 = vcmp.eq.s32.totalorder %v282_v35, %v3076_v13  ;;  %vm522_vm7 = vcmp.eq.s32.totalorder %v283_v61, %v3076_v13 }
  0x87   : > { %5884 = vst [vmem:[#allocation70_spill] sm:$0xff] %v5883_v48  ;;  %v5886_v42 = vsel %vm4134_vm0, 4294967295, %v5885_v42  ;;  %2259 = vmatprep.subr.msk.bf16.mxu0 %vm4134_vm0, %v3021_v15  ;;  %vm4143_vm8 = vmpackc.low %vm523_vm14, %vm519_vm13  ;;  %v5888_v30 = vmov 0  ;;  %vm525_vm5 = vcmp.eq.s32.totalorder %v284_v59, %v3070_v10  ;;  %vm529_vm3 = vcmp.eq.s32.totalorder %v285_v9, %v3070_v10 }
  0x88   : > { %5887 = vst [vmem:[#allocation71_spill] sm:$0xff] %v5886_v42  ;;  %v5889_v30 = vsel %vm4143_vm8, 4294967295, %v5888_v30  ;;  %v286_v48 = vadd.s32 432, %v3057_v1  ;;  %v287_v4 = vadd.s32 440, %v3057_v1  ;;  %2387 = vmatprep.subr.msk.bf16.mxu1 %vm4143_vm8, %v3021_v15  ;;  %vm4154_vm10 = vmpackc.low %vm520_vm1, %vm516_vm2  ;;  %v5891_v61 = vmov 0 }
  0x89   : > { %5890 = vst [vmem:[#allocation72_spill] sm:$0xff] %v5889_v30  ;;  %v5892_v61 = vsel %vm4154_vm10, 4294967295, %v5891_v61  ;;  %vm527_vm6 = vcmp.eq.s32.totalorder %v284_v59, %v3072_v11  ;;  %vm531_vm13 = vcmp.eq.s32.totalorder %v285_v9, %v3072_v11  ;;  %2261 = vmatpush1.bf16.msk.msra.mxu0 %vm4154_vm10, %v3021_v15  ;;  %vm4163_vm14 = vmpackc.low %vm522_vm7, %vm518_vm11  ;;  %v5894_v35 = vmov 0 }
  0x8a   : > { %5893 = vst [vmem:[#allocation73_spill] sm:$0xff] %v5892_v61  ;;  %v5895_v35 = vsel %vm4163_vm14, 4294967295, %v5894_v35  ;;  %vm524_vm0 = vcmp.eq.s32.totalorder %v284_v59, %v3074_v12  ;;  %vm528_vm8 = vcmp.eq.s32.totalorder %v285_v9, %v3074_v12  ;;  %2389 = vmatpush1.bf16.msk.msra.mxu1 %vm4163_vm14, %v3021_v15  ;;  %vm4172_vm2 = vmpackc.low %vm529_vm3, %vm525_vm5  ;;  %v5897_v30 = vmov 0 }
  0x8b   : > { %5896 = vst [vmem:[#allocation74_spill] sm:$0xff] %v5895_v35  ;;  %v5898_v30 = vsel %vm4172_vm2, 4294967295, %v5897_v30  ;;  %vm526_vm1 = vcmp.eq.s32.totalorder %v284_v59, %v3076_v13  ;;  %vm530_vm10 = vcmp.eq.s32.totalorder %v285_v9, %v3076_v13  ;;  %2263 = vmatprep.subr.msk.bf16.mxu0 %vm4172_vm2, %v3021_v15  ;;  %vm4181_vm7 = vmpackc.low %vm531_vm13, %vm527_vm6  ;;  %v5900_v61 = vmov 0 }
  0x8c   : > { %5899 = vst [vmem:[#allocation75_spill] sm:$0xff] %v5898_v30  ;;  %v5901_v61 = vsel %vm4181_vm7, 4294967295, %v5900_v61  ;;  %vm533_vm11 = vcmp.eq.s32.totalorder %v286_v48, %v3070_v10  ;;  %vm537_vm14 = vcmp.eq.s32.totalorder %v287_v4, %v3070_v10  ;;  %v288_v35 = vadd.s32 448, %v3057_v1  ;;  %2391 = vmatprep.subr.msk.bf16.mxu1 %vm4181_vm7, %v3021_v15  ;;  %vm4192_vm3 = vmpackc.low %vm528_vm8, %vm524_vm0 }
  0x8d   : > { %5902 = vst [vmem:[#allocation76_spill] sm:$0xff] %v5901_v61  ;;  %v289_v42 = vadd.s32 456, %v3057_v1  ;;  %v5903_v59 = vmov 0  ;;  %vm535_vm5 = vcmp.eq.s32.totalorder %v286_v48, %v3072_v11  ;;  %vm539_vm6 = vcmp.eq.s32.totalorder %v287_v4, %v3072_v11  ;;  %2265 = vmatpush1.bf16.msk.msra.mxu0 %vm4192_vm3, %v3021_v15  ;;  %vm4201_vm13 = vmpackc.low %vm530_vm10, %vm526_vm1 }
  0x8e   : > { %v5904_v59 = vsel %vm4192_vm3, 4294967295, %v5903_v59  ;;  %v5906_v9 = vmov 0  ;;  %vm532_vm2 = vcmp.eq.s32.totalorder %v286_v48, %v3074_v12  ;;  %vm536_vm7 = vcmp.eq.s32.totalorder %v287_v4, %v3074_v12  ;;  %2393 = vmatpush1.bf16.msk.msra.mxu1 %vm4201_vm13, %v3021_v15  ;;  %vm4210_vm0 = vmpackc.low %vm537_vm14, %vm533_vm11 }
  0x8f   : > { %5905 = vst [vmem:[#allocation77_spill] sm:$0xff] %v5904_v59  ;;  %v5907_v9 = vsel %vm4201_vm13, 4294967295, %v5906_v9  ;;  %v5909_v61 = vmov 0  ;;  %vm534_vm8 = vcmp.eq.s32.totalorder %v286_v48, %v3076_v13  ;;  %vm538_vm3 = vcmp.eq.s32.totalorder %v287_v4, %v3076_v13  ;;  %2267 = vmatprep.subr.msk.bf16.mxu0 %vm4210_vm0, %v3021_v15  ;;  %vm4219_vm10 = vmpackc.low %vm539_vm6, %vm535_vm5 }
  0x90   : > { %5908 = vst [vmem:[#allocation78_spill] sm:$0xff] %v5907_v9  ;;  %v5910_v61 = vsel %vm4210_vm0, 4294967295, %v5909_v61  ;;  %v5912_v59 = vmov 0  ;;  %vm541_vm1 = vcmp.eq.s32.totalorder %v288_v35, %v3070_v10  ;;  %vm545_vm13 = vcmp.eq.s32.totalorder %v289_v42, %v3070_v10  ;;  %2395 = vmatprep.subr.msk.bf16.mxu1 %vm4219_vm10, %v3021_v15  ;;  %vm4230_vm14 = vmpackc.low %vm536_vm7, %vm532_vm2 }
  0x91   : > { %5911 = vst [vmem:[#allocation79_spill] sm:$0xff] %v5910_v61  ;;  %v5913_v59 = vsel %vm4219_vm10, 4294967295, %v5912_v59  ;;  %v290_v9 = vadd.s32 464, %v3057_v1  ;;  %v291_v30 = vadd.s32 472, %v3057_v1  ;;  %v5915_v4 = vmov 0  ;;  %2269 = vmatpush1.bf16.msk.msra.mxu0 %vm4230_vm14, %v3021_v15  ;;  %vm4239_vm6 = vmpackc.low %vm538_vm3, %vm534_vm8 }
  0x92   : > { %5914 = vst [vmem:[#allocation80_spill] sm:$0xff] %v5913_v59  ;;  %v5916_v4 = vsel %vm4230_vm14, 4294967295, %v5915_v4  ;;  %vm543_vm11 = vcmp.eq.s32.totalorder %v288_v35, %v3072_v11  ;;  %vm547_vm5 = vcmp.eq.s32.totalorder %v289_v42, %v3072_v11  ;;  %v5918_v48 = vmov 0  ;;  %2397 = vmatpush1.bf16.msk.msra.mxu1 %vm4239_vm6, %v3021_v15  ;;  %vm4248_vm2 = vmpackc.low %vm545_vm13, %vm541_vm1 }
  0x93   : > { %5917 = vst [vmem:[#allocation81_spill] sm:$0xff] %v5916_v4  ;;  %v5919_v48 = vsel %vm4239_vm6, 4294967295, %v5918_v48  ;;  %vm540_vm0 = vcmp.eq.s32.totalorder %v288_v35, %v3074_v12  ;;  %vm544_vm10 = vcmp.eq.s32.totalorder %v289_v42, %v3074_v12  ;;  %v5921_v59 = vmov 0  ;;  %2271 = vmatprep.subr.msk.bf16.mxu0 %vm4248_vm2, %v3021_v15  ;;  %vm4257_vm3 = vmpackc.low %vm547_vm5, %vm543_vm11 }
  0x94   : > { %5920 = vst [vmem:[#allocation82_spill] sm:$0xff] %v5919_v48  ;;  %v5922_v59 = vsel %vm4248_vm2, 4294967295, %v5921_v59  ;;  %vm542_vm7 = vcmp.eq.s32.totalorder %v288_v35, %v3076_v13  ;;  %vm546_vm14 = vcmp.eq.s32.totalorder %v289_v42, %v3076_v13  ;;  %v5924_v4 = vmov 0  ;;  %2399 = vmatprep.subr.msk.bf16.mxu1 %vm4257_vm3, %v3021_v15  ;;  %vm4268_vm13 = vmpackc.low %vm544_vm10, %vm540_vm0 }
  0x95   : > { %5923 = vst [vmem:[#allocation83_spill] sm:$0xff] %v5922_v59  ;;  %v5925_v4 = vsel %vm4257_vm3, 4294967295, %v5924_v4  ;;  %vm549_vm8 = vcmp.eq.s32.totalorder %v290_v9, %v3070_v10  ;;  %vm553_vm6 = vcmp.eq.s32.totalorder %v291_v30, %v3070_v10  ;;  %v292_v48 = vadd.s32 480, %v3057_v1  ;;  %2273 = vmatpush1.bf16.msk.msra.mxu0 %vm4268_vm13, %v3021_v15  ;;  %vm4277_vm5 = vmpackc.low %vm546_vm14, %vm542_vm7 }
  0x96   : > { %5926 = vst [vmem:[#allocation84_spill] sm:$0xff] %v5925_v4  ;;  %v293_v61 = vadd.s32 488, %v3057_v1  ;;  %v5927_v42 = vmov 0  ;;  %vm551_vm1 = vcmp.eq.s32.totalorder %v290_v9, %v3072_v11  ;;  %vm555_vm11 = vcmp.eq.s32.totalorder %v291_v30, %v3072_v11  ;;  %2401 = vmatpush1.bf16.msk.msra.mxu1 %vm4277_vm5, %v3021_v15  ;;  %vm4286_vm0 = vmpackc.low %vm553_vm6, %vm549_vm8 }
  0x97   : > { %v5928_v42 = vsel %vm4268_vm13, 4294967295, %v5927_v42  ;;  %v5930_v35 = vmov 0  ;;  %vm548_vm2 = vcmp.eq.s32.totalorder %v290_v9, %v3074_v12  ;;  %vm552_vm3 = vcmp.eq.s32.totalorder %v291_v30, %v3074_v12  ;;  %2275 = vmatprep.subr.msk.bf16.mxu0 %vm4286_vm0, %v3021_v15  ;;  %vm4295_vm14 = vmpackc.low %vm555_vm11, %vm551_vm1 }
  0x98   : > { %5929 = vst [vmem:[#allocation85_spill] sm:$0xff] %v5928_v42  ;;  %v5931_v35 = vsel %vm4277_vm5, 4294967295, %v5930_v35  ;;  %v5933_v4 = vmov 0  ;;  %vm550_vm10 = vcmp.eq.s32.totalorder %v290_v9, %v3076_v13  ;;  %vm554_vm13 = vcmp.eq.s32.totalorder %v291_v30, %v3076_v13  ;;  %2403 = vmatprep.subr.msk.bf16.mxu1 %vm4295_vm14, %v3021_v15  ;;  %vm4306_vm6 = vmpackc.low %vm552_vm3, %vm548_vm2 }
  0x99   : > { %5932 = vst [vmem:[#allocation86_spill] sm:$0xff] %v5931_v35  ;;  %v5934_v4 = vsel %vm4286_vm0, 4294967295, %v5933_v4  ;;  %v5936_v42 = vmov 0  ;;  %vm557_vm7 = vcmp.eq.s32.totalorder %v292_v48, %v3070_v10  ;;  %vm561_vm5 = vcmp.eq.s32.totalorder %v293_v61, %v3070_v10  ;;  %2277 = vmatpush1.bf16.msk.msra.mxu0 %vm4306_vm6, %v3021_v15  ;;  %vm4315_vm11 = vmpackc.low %vm554_vm13, %vm550_vm10 }
  0x9a   : > { %5935 = vst [vmem:[#allocation87_spill] sm:$0xff] %v5934_v4  ;;  %v5937_v42 = vsel %vm4295_vm14, 4294967295, %v5936_v42  ;;  %v294_v35 = vadd.s32 496, %v3057_v1  ;;  %v295_v59 = vadd.s32 504, %v3057_v1  ;;  %v5939_v30 = vmov 0  ;;  %2405 = vmatpush1.bf16.msk.msra.mxu1 %vm4315_vm11, %v3021_v15  ;;  %vm4324_vm2 = vmpackc.low %vm561_vm5, %vm557_vm7 }
  0x9b   : > { %5938 = vst [vmem:[#allocation88_spill] sm:$0xff] %v5937_v42  ;;  %v5940_v30 = vsel %vm4306_vm6, 4294967295, %v5939_v30  ;;  %vm559_vm8 = vcmp.eq.s32.totalorder %v292_v48, %v3072_v11  ;;  %vm563_vm1 = vcmp.eq.s32.totalorder %v293_v61, %v3072_v11  ;;  %v5942_v9 = vmov 0  ;;  %2279 = vmatprep.subr.msk.bf16.mxu0 %vm4324_vm2, %v3021_v15 }
  0x9c   : > { %5941 = vst [vmem:[#allocation89_spill] sm:$0xff] %v5940_v30  ;;  %v5943_v9 = vsel %vm4315_vm11, 4294967295, %v5942_v9  ;;  %vm556_vm0 = vcmp.eq.s32.totalorder %v292_v48, %v3074_v12  ;;  %vm560_vm14 = vcmp.eq.s32.totalorder %v293_v61, %v3074_v12  ;;  %v5944_v1 = vmov 0  ;;  %vm4333_vm13 = vmpackc.low %vm563_vm1, %vm559_vm8 }
  0x9d   : > { %v5945_v1 = vsel %vm4324_vm2, 4294967295, %v5944_v1  ;;  %vm558_vm3 = vcmp.eq.s32.totalorder %v292_v48, %v3076_v13  ;;  %vm562_vm6 = vcmp.eq.s32.totalorder %v293_v61, %v3076_v13  ;;  %v5946_v30 = vmov 0  ;;  %2407 = vmatprep.subr.msk.bf16.mxu1 %vm4333_vm13, %v3021_v15  ;;  %vm4342_vm5 = vmpackc.low %vm560_vm14, %vm556_vm0 }
  0x9e   : > { %v5947_v30 = vsel %vm4333_vm13, 4294967295, %v5946_v30  ;;  %vm565_vm10 = vcmp.eq.s32.totalorder %v294_v35, %v3070_v10  ;;  %vm569_vm11 = vcmp.eq.s32.totalorder %v295_v59, %v3070_v10  ;;  %v5948_v48 = vmov 0  ;;  %2281 = vmatpush1.bf16.msk.msra.mxu0 %vm4342_vm5, %v3021_v15  ;;  %vm4351_vm8 = vmpackc.low %vm562_vm6, %vm558_vm3 }
  0x9f   : > { %v5949_v48 = vsel %vm4342_vm5, 4294967295, %v5948_v48  ;;  %vm567_vm7 = vcmp.eq.s32.totalorder %v294_v35, %v3072_v11  ;;  %vm571_vm2 = vcmp.eq.s32.totalorder %v295_v59, %v3072_v11  ;;  %vm564_vm1 = vcmp.eq.s32.totalorder %v294_v35, %v3074_v12  ;;  %2409 = vmatpush1.bf16.msk.msra.mxu1 %vm4351_vm8, %v3021_v15  ;;  %vm4360_vm0 = vmpackc.low %vm569_vm11, %vm565_vm10 }
  0xa0   : > { %vm568_vm13 = vcmp.eq.s32.totalorder %v295_v59, %v3074_v12  ;;  %vm566_vm14 = vcmp.eq.s32.totalorder %v294_v35, %v3076_v13  ;;  %vm570_vm5 = vcmp.eq.s32.totalorder %v295_v59, %v3076_v13  ;;  %2283 = vmatprep.subr.msk.bf16.mxu0 %vm4360_vm0, %v3021_v15  ;;  %vm4369_vm6 = vmpackc.low %vm571_vm2, %vm567_vm7  ;;  %v5954_v11 = vmov 0  ;;  %v6004_v59 = vld [vmem:[#allocation11_spill] sm:$0xff] }
  0xa1   : > { %v5955_v11 = vsel %vm4369_vm6, 4294967295, %v5954_v11  ;;  %2411 = vmatprep.subr.msk.bf16.mxu1 %vm4369_vm6, %v3021_v15  ;;  %vm4376_vm11 = vmpackc.low %vm568_vm13, %vm564_vm1  ;;  %v4382_v35 = vpack.c.bf16 %v3983_v2, %v3983_v2  ;;  %v5960_v13 = vmov 0  ;;  %vm5962_vm3 = vnez %v5619_v21  ;;  %v6006_v2 = vld [vmem:[#allocation12_spill] sm:$0xff]  ;;  %v6198_v21 = vld [vmem:[#allocation9_spill] sm:$0xff] }
  0xa2   : > { %5956 = vst [vmem:[#allocation90_spill] sm:$0xff] %v5955_v11  ;;  %2285 = vmatpush1.bf16.msk.msra.mxu0 %vm4376_vm11, %v3021_v15  ;;  %vm4387_vm2 = vmpackc.low %vm570_vm5, %vm566_vm14  ;;  %vm5963_vm13 = vnez %v5621_v22  ;;  %vm5964_vm10 = vnez %v5623_v25  ;;  %vm5965_vm5 = vnez %v5625_v26  ;;  %vm5966_vm7 = vnez %v5627_v27  ;;  %v6155_v11 = vld [vmem:[#allocation48_spill] sm:$0xff] }
  0xa3   : > { %5959 = vst [vmem:[#allocation91_spill] sm:$0xff] %v4382_v35  ;;  %v5961_v13 = vsel %vm4387_vm2, 4294967295, %v5960_v13  ;;  %2413 = vmatpush1.bf16.msk.msra.mxu1 %vm4387_vm2, %v3021_v15  ;;  %2415 = vmatprep.subr.msk.bf16.mxu0 %vm3084_vm4, %v3021_v15  ;;  %vm5967_vm1 = vnez %v5629_v28  ;;  %vm5968_vm14 = vnez %v5631_v31 }
  0xa4   : > { %2543 = vmatprep.subr.msk.bf16.mxu1 %vm3097_vm9, %v3021_v15 }
  0xa5   : > { %1344 = vmatmul.mubr.bf16.vlgmr.msra.gmra.mrb[0].mxu0 %v4382_v35 }
  0xa6   : > { %1426 = vmatmul.mubr.bf16.vlgmr.msra.gmra.mrb[0].mxu1 %v4382_v35  ;;  %2417 = vmatpush1.bf16.msk.msra.mxu0 %vm3108_vm12, %v3021_v15  ;;  %v6008_v35 = vld [vmem:[#allocation14_spill] sm:$0xff] }
  0xa7   : > { %2545 = vmatpush1.bf16.msk.msra.mxu1 %vm3117_vm15, %v3021_v15  ;;  %2419 = vmatprep.subr.msk.bf16.mxu0 %vm5962_vm3, %v3021_v15 }
  0xa8   : > { %2547 = vmatprep.subr.msk.bf16.mxu1 %vm5963_vm13, %v3021_v15  ;;  %1466 = vmatprep.mubr.bf16.mxu0 %v3453_v17  ;;  %vm5969_vm13 = vnez %v5633_v32 }
  0xa9   : > { %1548 = vmatprep.mubr.bf16.mxu1 %v3453_v17  ;;  %v6002_v17 = vld [vmem:[#allocation10_spill] sm:$0xff] }
  0xaa   : > { %2421 = vmatpush1.bf16.msk.msra.mxu0 %vm5964_vm10, %v3021_v15  ;;  %vm5970_vm10 = vnez %v5635_v33 }
  0xab   : > { %2549 = vmatpush1.bf16.msk.msra.mxu1 %vm5965_vm5, %v3021_v15  ;;  %2423 = vmatprep.subr.msk.bf16.mxu0 %vm5966_vm7, %v3021_v15  ;;  %vm5971_vm5 = vnez %v5637_v34  ;;  %vm5972_vm7 = vnez %v5639_v37 }
  0xac   : > { %2551 = vmatprep.subr.msk.bf16.mxu1 %vm5967_vm1, %v3021_v15  ;;  %vm5973_vm1 = vnez %v5641_v38 }
  0xae   : > { %2425 = vmatpush1.bf16.msk.msra.mxu0 %vm5968_vm14, %v3021_v15  ;;  %vm5974_vm14 = vnez %v5643_v39 }
  0xaf   : > { %2553 = vmatpush1.bf16.msk.msra.mxu1 %vm5969_vm13, %v3021_v15  ;;  %2427 = vmatprep.subr.msk.bf16.mxu0 %vm5970_vm10, %v3021_v15  ;;  %vm5975_vm13 = vnez %v5645_v40  ;;  %vm5976_vm10 = vnez %v5647_v43 }
  0xb0   : > { %2555 = vmatprep.subr.msk.bf16.mxu1 %vm5971_vm5, %v3021_v15  ;;  %vm5977_vm5 = vnez %v5649_v44 }
  0xb2   : > { %2429 = vmatpush1.bf16.msk.msra.mxu0 %vm5972_vm7, %v3021_v15  ;;  %vm5978_vm7 = vnez %v5651_v45 }
  0xb3   : > { %2557 = vmatpush1.bf16.msk.msra.mxu1 %vm5973_vm1, %v3021_v15  ;;  %2431 = vmatprep.subr.msk.bf16.mxu0 %vm5974_vm14, %v3021_v15  ;;  %vm5979_vm1 = vnez %v5653_v46  ;;  %vm5980_vm14 = vnez %v5655_v49 }
  0xb4   : > { %2559 = vmatprep.subr.msk.bf16.mxu1 %vm5975_vm13, %v3021_v15  ;;  %vm5981_vm13 = vnez %v5657_v50 }
  0xb6   : > { %2433 = vmatpush1.bf16.msk.msra.mxu0 %vm5976_vm10, %v3021_v15  ;;  %vm5982_vm10 = vnez %v5659_v51 }
  0xb7   : > { %2561 = vmatpush1.bf16.msk.msra.mxu1 %vm5977_vm5, %v3021_v15  ;;  %2435 = vmatprep.subr.msk.bf16.mxu0 %vm5978_vm7, %v3021_v15  ;;  %vm5983_vm5 = vnez %v5661_v52  ;;  %vm5984_vm7 = vnez %v5663_v55 }
  0xb8   : > { %2563 = vmatprep.subr.msk.bf16.mxu1 %vm5979_vm1, %v3021_v15  ;;  %vm5985_vm1 = vnez %v5665_v56 }
  0xba   : > { %2437 = vmatpush1.bf16.msk.msra.mxu0 %vm5980_vm14, %v3021_v15  ;;  %vm5986_vm14 = vnez %v5667_v57 }
  0xbb   : > { %2565 = vmatpush1.bf16.msk.msra.mxu1 %vm5981_vm13, %v3021_v15  ;;  %2439 = vmatprep.subr.msk.bf16.mxu0 %vm5982_vm10, %v3021_v15  ;;  %vm5987_vm13 = vnez %v5669_v58  ;;  %vm5988_vm10 = vnez %v5671_v62 }
  0xbc   : > { %2567 = vmatprep.subr.msk.bf16.mxu1 %vm5983_vm5, %v3021_v15  ;;  %vm5989_vm5 = vnez %v5673_v63 }
  0xbe   : > { %2441 = vmatpush1.bf16.msk.msra.mxu0 %vm5984_vm7, %v3021_v15  ;;  %vm5990_vm7 = vnez %v5675_v0 }
  0xbf   : > { %2569 = vmatpush1.bf16.msk.msra.mxu1 %vm5985_vm1, %v3021_v15  ;;  %2443 = vmatprep.subr.msk.bf16.mxu0 %vm5986_vm14, %v3021_v15  ;;  %vm5991_vm1 = vnez %v5677_v3  ;;  %vm5992_vm14 = vnez %v5679_v6 }
  0xc0   : > { %2571 = vmatprep.subr.msk.bf16.mxu1 %vm5987_vm13, %v3021_v15  ;;  %vm5993_vm13 = vnez %v5681_v7 }
  0xc2   : > { %2445 = vmatpush1.bf16.msk.msra.mxu0 %vm5988_vm10, %v3021_v15  ;;  %vm5994_vm10 = vnez %v5683_v8 }
  0xc3   : > { %2573 = vmatpush1.bf16.msk.msra.mxu1 %vm5989_vm5, %v3021_v15  ;;  %2447 = vmatprep.subr.msk.bf16.mxu0 %vm5990_vm7, %v3021_v15  ;;  %vm5995_vm5 = vnez %v5686_v18  ;;  %vm5996_vm7 = vnez %v5688_v29 }
  0xc4   : > { %2575 = vmatprep.subr.msk.bf16.mxu1 %vm5991_vm1, %v3021_v15  ;;  %vm5997_vm1 = vnez %v5690_v36  ;;  %v6024_v36 = vld [vmem:[#allocation21_spill] sm:$0xff] }
  0xc6   : > { %2449 = vmatpush1.bf16.msk.msra.mxu0 %vm5992_vm14, %v3021_v15  ;;  %vm5998_vm14 = vnez %v5694_v41 }
  0xc7   : > { %2577 = vmatpush1.bf16.msk.msra.mxu1 %vm5993_vm13, %v3021_v15  ;;  %2451 = vmatprep.subr.msk.bf16.mxu0 %vm5994_vm10, %v3021_v15  ;;  %vm5999_vm13 = vnez %v5697_v47  ;;  %vm6000_vm10 = vnez %v5700_v54  ;;  %v6010_v54 = vld [vmem:[#allocation15_spill] sm:$0xff] }
  0xc8   : > { %2579 = vmatprep.subr.msk.bf16.mxu1 %vm5995_vm5, %v3021_v15  ;;  %vm6001_vm5 = vnez %v5704_v60  ;;  %v6012_v60 = vld [vmem:[#allocation16_spill] sm:$0xff] }
  0xca   : > { %2453 = vmatpush1.bf16.msk.msra.mxu0 %vm5996_vm7, %v3021_v15  ;;  %vm6003_vm7 = vnez %v6002_v17  ;;  %v6014_v17 = vld [vmem:[#allocation17_spill] sm:$0xff] }
  0xcb   : > { %2581 = vmatpush1.bf16.msk.msra.mxu1 %vm5997_vm1, %v3021_v15  ;;  %2455 = vmatprep.subr.msk.bf16.mxu0 %vm5998_vm14, %v3021_v15  ;;  %vm6005_vm1 = vnez %v6004_v59  ;;  %vm6007_vm14 = vnez %v6006_v2  ;;  %v6016_v59 = vld [vmem:[#allocation18_spill] sm:$0xff]  ;;  %v6018_v2 = vld [vmem:[#allocation19_spill] sm:$0xff] }
  0xcc   : > { %2583 = vmatprep.subr.msk.bf16.mxu1 %vm5999_vm13, %v3021_v15  ;;  %vm6009_vm13 = vnez %v6008_v35  ;;  %v6020_v35 = vld [vmem:[#allocation20_spill] sm:$0xff] }
  0xce   : > { %2457 = vmatpush1.bf16.msk.msra.mxu0 %vm6000_vm10, %v3021_v15  ;;  %vm6011_vm10 = vnez %v6010_v54  ;;  %v6022_v54 = vld [vmem:[#allocation13_spill] sm:$0xff] }
  0xcf   : > { %2585 = vmatpush1.bf16.msk.msra.mxu1 %vm6001_vm5, %v3021_v15  ;;  %2459 = vmatprep.subr.msk.bf16.mxu0 %vm6003_vm7, %v3021_v15  ;;  %vm6013_vm5 = vnez %v6012_v60  ;;  %vm6015_vm7 = vnez %v6014_v17  ;;  %v1247_v47 = vunpack.c.l.bf16 %v6022_v54  ;;  %v6023_v60 = vld [vmem:[#allocation30_spill] sm:$0xff]  ;;  %v6032_v54 = vld [vmem:[#allocation25_spill] sm:$0xff] }
  0xd0   : > { %2587 = vmatprep.subr.msk.bf16.mxu1 %vm6005_vm1, %v3021_v15  ;;  %vm6017_vm1 = vnez %v6016_v59  ;;  %v1246_v41 = vunpack.c.l.bf16 %v6023_v60  ;;  %v6026_v17 = vld [vmem:[#allocation22_spill] sm:$0xff]  ;;  %v6028_v59 = vld [vmem:[#allocation23_spill] sm:$0xff] }
  0xd2   : > { %2461 = vmatpush1.bf16.msk.msra.mxu0 %vm6007_vm14, %v3021_v15  ;;  %vm6019_vm14 = vnez %v6018_v2  ;;  %v6030_v2 = vld [vmem:[#allocation24_spill] sm:$0xff]  ;;  %v4577_v60 = vcombine.low %v1246_v41, %v1247_v47  ;;  %v6046_v47 = vld [vmem:[#allocation33_spill] sm:$0xff] }
  0xd3   : > { %2589 = vmatpush1.bf16.msk.msra.mxu1 %vm6009_vm13, %v3021_v15  ;;  %2463 = vmatprep.subr.msk.bf16.mxu0 %vm6011_vm10, %v3021_v15  ;;  %vm6021_vm13 = vnez %v6020_v35  ;;  %v6044_v41 = vld [vmem:[#allocation32_spill] sm:$0xff] }
  0xd4   : > { %2591 = vmatprep.subr.msk.bf16.mxu1 %vm6013_vm5, %v3021_v15  ;;  %vm6025_vm5 = vnez %v6024_v36  ;;  %v6034_v36 = vld [vmem:[#allocation26_spill] sm:$0xff]  ;;  %vm6045_vm10 = vnez %v6044_v41  ;;  %v6055_v41 = vld [vmem:[#allocation37_spill] sm:$0xff] }
  0xd6   : > { %2465 = vmatpush1.bf16.msk.msra.mxu0 %vm6015_vm7, %v3021_v15  ;;  %vm6027_vm7 = vnez %v6026_v17  ;;  %v6036_v17 = vld [vmem:[#allocation27_spill] sm:$0xff] }
  0xd7   : > { %2593 = vmatpush1.bf16.msk.msra.mxu1 %vm6017_vm1, %v3021_v15  ;;  %2467 = vmatprep.subr.msk.bf16.mxu0 %vm6019_vm14, %v3021_v15  ;;  %vm6029_vm1 = vnez %v6028_v59  ;;  %vm6031_vm14 = vnez %v6030_v2  ;;  %v6038_v59 = vld [vmem:[#allocation28_spill] sm:$0xff]  ;;  %v6040_v2 = vld [vmem:[#allocation29_spill] sm:$0xff] }
  0xd8   : > { %2595 = vmatprep.subr.msk.bf16.mxu1 %vm6021_vm13, %v3021_v15  ;;  %vm6033_vm13 = vnez %v6032_v54  ;;  %v6042_v54 = vld [vmem:[#allocation31_spill] sm:$0xff] }
  0xda   : > { %2469 = vmatpush1.bf16.msk.msra.mxu0 %vm6025_vm5, %v3021_v15  ;;  %vm6035_vm5 = vnez %v6034_v36 }
  0xdb   : > { %2597 = vmatpush1.bf16.msk.msra.mxu1 %vm6027_vm7, %v3021_v15  ;;  %2471 = vmatprep.subr.msk.bf16.mxu0 %vm6029_vm1, %v3021_v15  ;;  %vm6037_vm7 = vnez %v6036_v17  ;;  %vm6039_vm1 = vnez %v6038_v59  ;;  %v6048_v17 = vld [vmem:[#allocation3_spill] sm:$0xff]  ;;  %v6049_v59 = vld [vmem:[#allocation34_spill] sm:$0xff] }
  0xdc   : > { %2599 = vmatprep.subr.msk.bf16.mxu1 %vm6031_vm14, %v3021_v15  ;;  %vm6041_vm14 = vnez %v6040_v2  ;;  %v6051_v2 = vld [vmem:[#allocation35_spill] sm:$0xff] }
  0xde   : > { %2473 = vmatpush1.bf16.msk.msra.mxu0 %vm6033_vm13, %v3021_v15  ;;  %vm6043_vm13 = vnez %v6042_v54  ;;  %v6053_v54 = vld [vmem:[#allocation36_spill] sm:$0xff] }
  0xdf   : > { %2601 = vmatpush1.bf16.msk.msra.mxu1 %vm6035_vm5, %v3021_v15  ;;  %2475 = vmatprep.subr.msk.bf16.mxu0 %vm6037_vm7, %v3021_v15  ;;  %vm6047_vm5 = vnez %v6046_v47 }
  0xe0   : > { %2603 = vmatprep.subr.msk.bf16.mxu1 %vm6039_vm1, %v3021_v15  ;;  %vm6050_vm1 = vnez %v6049_v59  ;;  %v6057_v59 = vld [vmem:[#allocation38_spill] sm:$0xff] }
  0xe2   : > { %2477 = vmatpush1.bf16.msk.msra.mxu0 %vm6041_vm14, %v3021_v15  ;;  %vm6052_vm14 = vnez %v6051_v2  ;;  %v6061_v2 = vld [vmem:[#allocation40_spill] sm:$0xff] }
  0xe3   : > { %2605 = vmatpush1.bf16.msk.msra.mxu1 %vm6043_vm13, %v3021_v15  ;;  %2479 = vmatprep.subr.msk.bf16.mxu0 %vm6045_vm10, %v3021_v15  ;;  %vm6054_vm13 = vnez %v6053_v54  ;;  %vm6056_vm10 = vnez %v6055_v41  ;;  %v6063_v54 = vld [vmem:[#allocation41_spill] sm:$0xff]  ;;  %v6065_v41 = vld [vmem:[#allocation42_spill] sm:$0xff] }
  0xe4   : > { %2607 = vmatprep.subr.msk.bf16.mxu1 %vm6047_vm5, %v3021_v15 }
  0xe5   : > { %1467 = vmatmul.mubr.bf16.vlgmr.msra.gmra.mrb[0].mxu0 %v6048_v17 }
  0xe6   : > { %2481 = vmatpush1.bf16.msk.msra.mxu0 %vm6050_vm1, %v3021_v15  ;;  %1549 = vmatmul.mubr.bf16.vlgmr.msra.gmra.mrb[0].mxu1 %v6048_v17  ;;  %vm6058_vm1 = vnez %v6057_v59  ;;  %v6059_v17 = vld [vmem:[#allocation39_spill] sm:$0xff]  ;;  %v6069_v59 = vld [vmem:[#allocation44_spill] sm:$0xff] }
  0xe7   : > { %2609 = vmatpush1.bf16.msk.msra.mxu1 %vm6052_vm14, %v3021_v15  ;;  %2483 = vmatprep.subr.msk.bf16.mxu0 %vm6054_vm13, %v3021_v15  ;;  %vm6060_vm5 = vnez %v6059_v17  ;;  %vm6062_vm14 = vnez %v6061_v2  ;;  %vm6064_vm13 = vnez %v6063_v54  ;;  %v6071_v17 = vld [vmem:[#allocation45_spill] sm:$0xff]  ;;  %v6073_v2 = vld [vmem:[#allocation46_spill] sm:$0xff]  ;;  %v6075_v54 = vld [vmem:[#allocation47_spill] sm:$0xff] }
  0xe8   : > { %2611 = vmatprep.subr.msk.bf16.mxu1 %vm6056_vm10, %v3021_v15  ;;  %1507 = vmatprep.mubr.bf16.mxu0 %v3910_v53  ;;  %vm6066_vm10 = vnez %v6065_v41  ;;  %v6077_v41 = vld [vmem:[#allocation49_spill] sm:$0xff] }
  0xe9   : > { %1589 = vmatprep.mubr.bf16.mxu1 %v3910_v53  ;;  %v6067_v53 = vld [vmem:[#allocation43_spill] sm:$0xff] }
  0xea   : > { %2485 = vmatpush1.bf16.msk.msra.mxu0 %vm6058_vm1, %v3021_v15  ;;  %vm6068_vm7 = vnez %v6067_v53  ;;  %vm6070_vm1 = vnez %v6069_v59  ;;  %v6080_v59 = vld [vmem:[#allocation51_spill] sm:$0xff] }
  0xeb   : > { %2613 = vmatpush1.bf16.msk.msra.mxu1 %vm6060_vm5, %v3021_v15  ;;  %2487 = vmatprep.subr.msk.bf16.mxu0 %vm6062_vm14, %v3021_v15  ;;  %vm6072_vm5 = vnez %v6071_v17  ;;  %vm6074_vm14 = vnez %v6073_v2  ;;  %v6082_v17 = vld [vmem:[#allocation52_spill] sm:$0xff]  ;;  %v6084_v2 = vld [vmem:[#allocation53_spill] sm:$0xff] }
  0xec   : > { %2615 = vmatprep.subr.msk.bf16.mxu1 %vm6064_vm13, %v3021_v15  ;;  %vm6076_vm13 = vnez %v6075_v54  ;;  %v6086_v54 = vld [vmem:[#allocation54_spill] sm:$0xff] }
  0xee   : > { %2489 = vmatpush1.bf16.msk.msra.mxu0 %vm6066_vm10, %v3021_v15  ;;  %vm6078_vm10 = vnez %v6077_v41  ;;  %v6088_v41 = vld [vmem:[#allocation56_spill] sm:$0xff] }
  0xef   : > { %2617 = vmatpush1.bf16.msk.msra.mxu1 %vm6068_vm7, %v3021_v15  ;;  %2491 = vmatprep.subr.msk.bf16.mxu0 %vm6070_vm1, %v3021_v15  ;;  %vm6079_vm7 = vnez %v5821_v23  ;;  %vm6081_vm1 = vnez %v6080_v59  ;;  %v6090_v23 = vld [vmem:[#allocation57_spill] sm:$0xff] }
  0xf0   : > { %2619 = vmatprep.subr.msk.bf16.mxu1 %vm6072_vm5, %v3021_v15  ;;  %vm6083_vm5 = vnez %v6082_v17  ;;  %v6093_v17 = vld [vmem:[#allocation59_spill] sm:$0xff] }
  0xf2   : > { %2493 = vmatpush1.bf16.msk.msra.mxu0 %vm6074_vm14, %v3021_v15  ;;  %vm6085_vm14 = vnez %v6084_v2  ;;  %v6095_v2 = vld [vmem:[#allocation61_spill] sm:$0xff] }
  0xf3   : > { %2621 = vmatpush1.bf16.msk.msra.mxu1 %vm6076_vm13, %v3021_v15  ;;  %2495 = vmatprep.subr.msk.bf16.mxu0 %vm6078_vm10, %v3021_v15  ;;  %vm6087_vm13 = vnez %v6086_v54  ;;  %vm6089_vm10 = vnez %v6088_v41  ;;  %v6097_v54 = vld [vmem:[#allocation62_spill] sm:$0xff] }
  0xf4   : > { %2623 = vmatprep.subr.msk.bf16.mxu1 %vm6079_vm7, %v3021_v15  ;;  %vm6091_vm7 = vnez %v6090_v23  ;;  %v6100_v23 = vld [vmem:[#allocation64_spill] sm:$0xff] }
  0xf6   : > { %2497 = vmatpush1.bf16.msk.msra.mxu0 %vm6081_vm1, %v3021_v15  ;;  %vm6092_vm1 = vnez %v5847_v5  ;;  %v6102_v5 = vld [vmem:[#allocation65_spill] sm:$0xff] }
  0xf7   : > { %2625 = vmatpush1.bf16.msk.msra.mxu1 %vm6083_vm5, %v3021_v15  ;;  %2499 = vmatprep.subr.msk.bf16.mxu0 %vm6085_vm14, %v3021_v15  ;;  %vm6094_vm5 = vnez %v6093_v17  ;;  %vm6096_vm14 = vnez %v6095_v2  ;;  %v6104_v17 = vld [vmem:[#allocation66_spill] sm:$0xff]  ;;  %v6106_v2 = vld [vmem:[#allocation67_spill] sm:$0xff] }
  0xf8   : > { %2627 = vmatprep.subr.msk.bf16.mxu1 %vm6087_vm13, %v3021_v15  ;;  %vm6098_vm13 = vnez %v6097_v54  ;;  %v6108_v54 = vld [vmem:[#allocation68_spill] sm:$0xff] }
  0xfa   : > { %2501 = vmatpush1.bf16.msk.msra.mxu0 %vm6089_vm10, %v3021_v15  ;;  %vm6099_vm10 = vnez %v5861_v24  ;;  %v6110_v24 = vld [vmem:[#allocation69_spill] sm:$0xff] }
  0xfb   : > { %2629 = vmatpush1.bf16.msk.msra.mxu1 %vm6091_vm7, %v3021_v15  ;;  %2503 = vmatprep.subr.msk.bf16.mxu0 %vm6092_vm1, %v3021_v15  ;;  %vm6101_vm7 = vnez %v6100_v23  ;;  %vm6103_vm1 = vnez %v6102_v5  ;;  %v6112_v23 = vld [vmem:[#allocation70_spill] sm:$0xff]  ;;  %v6114_v5 = vld [vmem:[#allocation71_spill] sm:$0xff] }
  0xfc   : > { %2631 = vmatprep.subr.msk.bf16.mxu1 %vm6094_vm5, %v3021_v15  ;;  %vm6105_vm5 = vnez %v6104_v17  ;;  %v6116_v17 = vld [vmem:[#allocation72_spill] sm:$0xff] }
  0xfe   : > { %2505 = vmatpush1.bf16.msk.msra.mxu0 %vm6096_vm14, %v3021_v15  ;;  %vm6107_vm14 = vnez %v6106_v2  ;;  %v6118_v2 = vld [vmem:[#allocation73_spill] sm:$0xff] }
  0xff   : > { %2633 = vmatpush1.bf16.msk.msra.mxu1 %vm6098_vm13, %v3021_v15  ;;  %2507 = vmatprep.subr.msk.bf16.mxu0 %vm6099_vm10, %v3021_v15  ;;  %vm6109_vm13 = vnez %v6108_v54  ;;  %vm6111_vm10 = vnez %v6110_v24  ;;  %v6120_v54 = vld [vmem:[#allocation74_spill] sm:$0xff]  ;;  %v6122_v24 = vld [vmem:[#allocation75_spill] sm:$0xff] }
 0x100   : > { %2635 = vmatprep.subr.msk.bf16.mxu1 %vm6101_vm7, %v3021_v15  ;;  %vm6113_vm7 = vnez %v6112_v23  ;;  %v6124_v23 = vld [vmem:[#allocation76_spill] sm:$0xff] }
 0x102   : > { %2509 = vmatpush1.bf16.msk.msra.mxu0 %vm6103_vm1, %v3021_v15  ;;  %vm6115_vm1 = vnez %v6114_v5  ;;  %v6126_v5 = vld [vmem:[#allocation77_spill] sm:$0xff] }
 0x103   : > { %2637 = vmatpush1.bf16.msk.msra.mxu1 %vm6105_vm5, %v3021_v15  ;;  %2511 = vmatprep.subr.msk.bf16.mxu0 %vm6107_vm14, %v3021_v15  ;;  %vm6117_vm5 = vnez %v6116_v17  ;;  %vm6119_vm14 = vnez %v6118_v2  ;;  %v6128_v17 = vld [vmem:[#allocation78_spill] sm:$0xff]  ;;  %v6130_v2 = vld [vmem:[#allocation79_spill] sm:$0xff] }
 0x104   : > { %2639 = vmatprep.subr.msk.bf16.mxu1 %vm6109_vm13, %v3021_v15  ;;  %vm6121_vm13 = vnez %v6120_v54  ;;  %v6132_v54 = vld [vmem:[#allocation80_spill] sm:$0xff] }
 0x106   : > { %2513 = vmatpush1.bf16.msk.msra.mxu0 %vm6111_vm10, %v3021_v15  ;;  %vm6123_vm10 = vnez %v6122_v24  ;;  %v6134_v24 = vld [vmem:[#allocation81_spill] sm:$0xff] }
 0x107   : > { %2641 = vmatpush1.bf16.msk.msra.mxu1 %vm6113_vm7, %v3021_v15  ;;  %2515 = vmatprep.subr.msk.bf16.mxu0 %vm6115_vm1, %v3021_v15  ;;  %vm6125_vm7 = vnez %v6124_v23  ;;  %vm6127_vm1 = vnez %v6126_v5  ;;  %v6136_v23 = vld [vmem:[#allocation82_spill] sm:$0xff]  ;;  %v6138_v5 = vld [vmem:[#allocation83_spill] sm:$0xff] }
 0x108   : > { %2643 = vmatprep.subr.msk.bf16.mxu1 %vm6117_vm5, %v3021_v15  ;;  %vm6129_vm5 = vnez %v6128_v17  ;;  %v6140_v17 = vld [vmem:[#allocation84_spill] sm:$0xff] }
 0x10a   : > { %2517 = vmatpush1.bf16.msk.msra.mxu0 %vm6119_vm14, %v3021_v15  ;;  %vm6131_vm14 = vnez %v6130_v2  ;;  %v6142_v2 = vld [vmem:[#allocation85_spill] sm:$0xff] }
 0x10b   : > { %2645 = vmatpush1.bf16.msk.msra.mxu1 %vm6121_vm13, %v3021_v15  ;;  %2519 = vmatprep.subr.msk.bf16.mxu0 %vm6123_vm10, %v3021_v15  ;;  %vm6133_vm13 = vnez %v6132_v54  ;;  %vm6135_vm10 = vnez %v6134_v24  ;;  %v6144_v54 = vld [vmem:[#allocation86_spill] sm:$0xff] }
 0x10c   : > { %2647 = vmatprep.subr.msk.bf16.mxu1 %vm6125_vm7, %v3021_v15  ;;  %vm6137_vm7 = vnez %v6136_v23 }
 0x10e   : > { %2521 = vmatpush1.bf16.msk.msra.mxu0 %vm6127_vm1, %v3021_v15  ;;  %vm6139_vm1 = vnez %v6138_v5  ;;  %v6148_v5 = vld [vmem:[#allocation89_spill] sm:$0xff] }
 0x10f   : > { %2649 = vmatpush1.bf16.msk.msra.mxu1 %vm6129_vm5, %v3021_v15  ;;  %2523 = vmatprep.subr.msk.bf16.mxu0 %vm6131_vm14, %v3021_v15  ;;  %vm6141_vm5 = vnez %v6140_v17  ;;  %vm6143_vm14 = vnez %v6142_v2 }
 0x110   : > { %2651 = vmatprep.subr.msk.bf16.mxu1 %vm6133_vm13, %v3021_v15  ;;  %vm6145_vm13 = vnez %v6144_v54 }
 0x112   : > { %2525 = vmatpush1.bf16.msk.msra.mxu0 %vm6135_vm10, %v3021_v15  ;;  %vm6146_vm10 = vnez %v5934_v4  ;;  %v6153_v4 = vld [vmem:[#allocation8_spill] sm:$0xff] }
 0x113   : > { %2653 = vmatpush1.bf16.msk.msra.mxu1 %vm6137_vm7, %v3021_v15  ;;  %2527 = vmatprep.subr.msk.bf16.mxu0 %vm6139_vm1, %v3021_v15  ;;  %vm6147_vm7 = vnez %v5937_v42  ;;  %vm6149_vm1 = vnez %v6148_v5  ;;  %v4774_v42 = vsub.f32 %v6153_v4, %v4577_v60 }
 0x114   : > { %2655 = vmatprep.subr.msk.bf16.mxu1 %vm6141_vm5, %v3021_v15  ;;  %vm6150_vm5 = vnez %v5943_v9 }
 0x115   : > { %v1262_v4 = vcombine.high %v4774_v42, %v4774_v42 }
 0x116   : > { %2529 = vmatpush1.bf16.msk.msra.mxu0 %vm6143_vm14, %v3021_v15  ;;  %vm6151_vm14 = vnez %v5945_v1 }
 0x117   : > { %2657 = vmatpush1.bf16.msk.msra.mxu1 %vm6145_vm13, %v3021_v15  ;;  %2531 = vmatprep.subr.msk.bf16.mxu0 %vm6146_vm10, %v3021_v15  ;;  %vm6152_vm13 = vnez %v5947_v30  ;;  %v1267_v60 = vpack.c.bf16 %v1262_v4, %v1262_v4  ;;  %v6265_v4 = vld [vmem:[#allocation45_spill] sm:$0xff] }
 0x118   : > { %2659 = vmatprep.subr.msk.bf16.mxu1 %vm6147_vm7, %v3021_v15  ;;  %vm6154_vm7 = vnez %v5949_v48 }
 0x11a   : > { %2533 = vmatpush1.bf16.msk.msra.mxu0 %vm6149_vm1, %v3021_v15 }
 0x11b   : > { %2661 = vmatpush1.bf16.msk.msra.mxu1 %vm6150_vm5, %v3021_v15  ;;  %2535 = vmatprep.subr.msk.bf16.mxu0 %vm6151_vm14, %v3021_v15 }
 0x11c   : > { %2663 = vmatprep.subr.msk.bf16.mxu1 %vm6152_vm13, %v3021_v15 }
 0x11e   : > { %2537 = vmatpush1.bf16.msk.msra.mxu0 %vm6154_vm7, %v3021_v15 }
 0x11f   : > { %2665 = vmatpush1.bf16.msk.msra.mxu1 %vm4351_vm8, %v3021_v15  ;;  %2539 = vmatprep.subr.msk.bf16.mxu0 %vm4360_vm0, %v3021_v15 }
 0x120   : > { %2667 = vmatprep.subr.msk.bf16.mxu1 %vm4369_vm6, %v3021_v15 }
 0x122   : > { %2541 = vmatpush1.bf16.msk.msra.mxu0 %vm4376_vm11, %v3021_v15 }
 0x123   : > { %2669 = vmatpush1.bf16.msk.msra.mxu1 %vm4387_vm2, %v3021_v15  ;;  %2671 = vmatprep.subr.msk.bf16.mxu0 %vm3084_vm4, %v3021_v15  ;;  %vm6156_vm4 = vnez %v5621_v22  ;;  %vm6162_vm2 = vnez %v5633_v32  ;;  %v6200_v22 = vld [vmem:[#allocation10_spill] sm:$0xff] }
 0x124   : > { %2799 = vmatprep.subr.msk.bf16.mxu1 %vm3097_vm9, %v3021_v15  ;;  %vm6157_vm9 = vnez %v5623_v25  ;;  %v6202_v25 = vld [vmem:[#allocation11_spill] sm:$0xff] }
 0x125   : > { %1508 = vmatmul.mubr.bf16.vlgmr.msra.gmra.mrb[0].mxu0 %v6155_v11 }
 0x126   : > { %1590 = vmatmul.mubr.bf16.vlgmr.msra.gmra.mrb[0].mxu1 %v6155_v11  ;;  %2673 = vmatpush1.bf16.msk.msra.mxu0 %vm3108_vm12, %v3021_v15  ;;  %vm6158_vm12 = vnez %v5625_v26  ;;  %v6204_v26 = vld [vmem:[#allocation12_spill] sm:$0xff]  ;;  %v6258_v11 = vld [vmem:[#allocation41_spill] sm:$0xff] }
 0x127   : > { %2801 = vmatpush1.bf16.msk.msra.mxu1 %vm3117_vm15, %v3021_v15  ;;  %2675 = vmatprep.subr.msk.bf16.mxu0 %vm5962_vm3, %v3021_v15  ;;  %vm6159_vm15 = vnez %v5627_v27  ;;  %vm6160_vm3 = vnez %v5629_v28  ;;  %v6206_v27 = vld [vmem:[#allocation14_spill] sm:$0xff]  ;;  %v6208_v28 = vld [vmem:[#allocation15_spill] sm:$0xff] }
 0x128   : > { %2803 = vmatprep.subr.msk.bf16.mxu1 %vm6156_vm4, %v3021_v15  ;;  %1630 = vmatprep.mubr.bf16.mxu0 %v1267_v60  ;;  %vm6161_vm4 = vnez %v5631_v31  ;;  %v6210_v31 = vld [vmem:[#allocation60_spill] sm:$0xff] }
 0x129   : > { %1712 = vmatprep.mubr.bf16.mxu1 %v1267_v60  ;;  %v1249_v32 = vunpack.c.l.bf16 %v6210_v31  ;;  %v6267_v60 = vld [vmem:[#allocation46_spill] sm:$0xff]  ;;  %v6297_v31 = vld [vmem:[#allocation65_spill] sm:$0xff] }
 0x12a   : > { %2677 = vmatpush1.bf16.msk.msra.mxu0 %vm6157_vm9, %v3021_v15  ;;  %vm6163_vm9 = vnez %v5635_v33  ;;  %v6211_v33 = vld [vmem:[#allocation16_spill] sm:$0xff] }
 0x12b   : > { %2805 = vmatpush1.bf16.msk.msra.mxu1 %vm6158_vm12, %v3021_v15  ;;  %2679 = vmatprep.subr.msk.bf16.mxu0 %vm6159_vm15, %v3021_v15  ;;  %vm6164_vm12 = vnez %v5637_v34  ;;  %vm6165_vm15 = vnez %v5639_v37  ;;  %v6213_v34 = vld [vmem:[#allocation91_spill] sm:$0xff] }
 0x12c   : > { %2807 = vmatprep.subr.msk.bf16.mxu1 %vm6160_vm3, %v3021_v15  ;;  %vm6166_vm3 = vnez %v5641_v38  ;;  %v1248_v37 = vunpack.c.l.bf16 %v6213_v34  ;;  %v6214_v38 = vld [vmem:[#allocation17_spill] sm:$0xff]  ;;  %v6303_v34 = vld [vmem:[#allocation68_spill] sm:$0xff] }
 0x12e   : > { %2681 = vmatpush1.bf16.msk.msra.mxu0 %vm6161_vm4, %v3021_v15  ;;  %vm6167_vm4 = vnez %v5643_v39  ;;  %v6216_v39 = vld [vmem:[#allocation18_spill] sm:$0xff] }
 0x12f   : > { %2809 = vmatpush1.bf16.msk.msra.mxu1 %vm6162_vm2, %v3021_v15  ;;  %2683 = vmatprep.subr.msk.bf16.mxu0 %vm6163_vm9, %v3021_v15  ;;  %vm6168_vm2 = vnez %v5645_v40  ;;  %vm6169_vm9 = vnez %v5647_v43  ;;  %v6218_v40 = vld [vmem:[#allocation19_spill] sm:$0xff]  ;;  %v1255_v43 = vcombine.low %v1248_v37, %v1249_v32  ;;  %v6299_v32 = vld [vmem:[#allocation66_spill] sm:$0xff]  ;;  %v6305_v37 = vld [vmem:[#allocation69_spill] sm:$0xff] }
 0x130   : > { %2811 = vmatprep.subr.msk.bf16.mxu1 %vm6164_vm12, %v3021_v15  ;;  %vm6170_vm12 = vnez %v5649_v44  ;;  %v6221_v44 = vld [vmem:[#allocation21_spill] sm:$0xff] }
 0x132   : > { %2685 = vmatpush1.bf16.msk.msra.mxu0 %vm6165_vm15, %v3021_v15  ;;  %vm6171_vm15 = vnez %v5651_v45  ;;  %v6223_v45 = vld [vmem:[#allocation22_spill] sm:$0xff] }
 0x133   : > { %2813 = vmatpush1.bf16.msk.msra.mxu1 %vm6166_vm3, %v3021_v15  ;;  %2687 = vmatprep.subr.msk.bf16.mxu0 %vm6167_vm4, %v3021_v15  ;;  %vm6172_vm3 = vnez %v5653_v46  ;;  %vm6173_vm4 = vnez %v5655_v49  ;;  %v6225_v46 = vld [vmem:[#allocation23_spill] sm:$0xff]  ;;  %v6227_v49 = vld [vmem:[#allocation24_spill] sm:$0xff] }
 0x134   : > { %2815 = vmatprep.subr.msk.bf16.mxu1 %vm6168_vm2, %v3021_v15  ;;  %vm6174_vm2 = vnez %v5657_v50  ;;  %v6229_v50 = vld [vmem:[#allocation55_spill] sm:$0xff] }
 0x136   : > { %2689 = vmatpush1.bf16.msk.msra.mxu0 %vm6169_vm9, %v3021_v15  ;;  %vm6175_vm9 = vnez %v5659_v51  ;;  %v4975_v51 = vsub.f32 %v6229_v50, %v1255_v43  ;;  %v6313_v43 = vld [vmem:[#allocation73_spill] sm:$0xff]  ;;  %v6323_v50 = vld [vmem:[#allocation78_spill] sm:$0xff] }
 0x137   : > { %2817 = vmatpush1.bf16.msk.msra.mxu1 %vm6170_vm12, %v3021_v15  ;;  %2691 = vmatprep.subr.msk.bf16.mxu0 %vm6171_vm15, %v3021_v15  ;;  %vm6176_vm12 = vnez %v5661_v52  ;;  %vm6177_vm15 = vnez %v5663_v55  ;;  %v6230_v52 = vld [vmem:[#allocation25_spill] sm:$0xff]  ;;  %v6233_v55 = vld [vmem:[#allocation27_spill] sm:$0xff] }
 0x138   : > { %2819 = vmatprep.subr.msk.bf16.mxu1 %vm6172_vm3, %v3021_v15  ;;  %vm6178_vm3 = vnez %v5665_v56  ;;  %v6235_v56 = vld [vmem:[#allocation28_spill] sm:$0xff]  ;;  %v1268_v5 = vpack.c.bf16 %v4975_v51, %v4975_v51 }
 0x13a   : > { %2693 = vmatpush1.bf16.msk.msra.mxu0 %vm6173_vm4, %v3021_v15  ;;  %vm6179_vm4 = vnez %v5667_v57  ;;  %v1263_v57 = vcombine.high %v4975_v51, %v4975_v51 }
 0x13b   : > { %2821 = vmatpush1.bf16.msk.msra.mxu1 %vm6174_vm2, %v3021_v15  ;;  %2695 = vmatprep.subr.msk.bf16.mxu0 %vm6175_vm9, %v3021_v15  ;;  %vm6180_vm2 = vnez %v5669_v58  ;;  %vm6181_vm9 = vnez %v5671_v62  ;;  %v1266_v58 = vpack.c.bf16 %v4774_v42, %v4774_v42  ;;  %v6237_v62 = vld [vmem:[#allocation29_spill] sm:$0xff]  ;;  %v6256_v42 = vld [vmem:[#allocation40_spill] sm:$0xff] }
 0x13c   : > { %2823 = vmatprep.subr.msk.bf16.mxu1 %vm6176_vm12, %v3021_v15  ;;  %vm6182_vm12 = vnez %v5673_v63  ;;  %v6239_v63 = vld [vmem:[#allocation31_spill] sm:$0xff] }
 0x13e   : > { %2697 = vmatpush1.bf16.msk.msra.mxu0 %vm6177_vm15, %v3021_v15  ;;  %vm6183_vm15 = vnez %v5675_v0  ;;  %v6241_v0 = vld [vmem:[#allocation32_spill] sm:$0xff] }
 0x13f   : > { %2825 = vmatpush1.bf16.msk.msra.mxu1 %vm6178_vm3, %v3021_v15  ;;  %2699 = vmatprep.subr.msk.bf16.mxu0 %vm6179_vm4, %v3021_v15  ;;  %vm6184_vm3 = vnez %v5677_v3  ;;  %vm6185_vm4 = vnez %v5679_v6  ;;  %v1269_v3 = vpack.c.bf16 %v1263_v57, %v1263_v57  ;;  %v6244_v6 = vld [vmem:[#allocation34_spill] sm:$0xff] }
 0x140   : > { %2827 = vmatprep.subr.msk.bf16.mxu1 %vm6180_vm2, %v3021_v15  ;;  %vm6186_vm2 = vnez %v5681_v7  ;;  %v6246_v7 = vld [vmem:[#allocation35_spill] sm:$0xff] }
 0x142   : > { %2701 = vmatpush1.bf16.msk.msra.mxu0 %vm6181_vm9, %v3021_v15  ;;  %vm6187_vm9 = vnez %v5683_v8  ;;  %v6248_v8 = vld [vmem:[#allocation36_spill] sm:$0xff] }
 0x143   : > { %2829 = vmatpush1.bf16.msk.msra.mxu1 %vm6182_vm12, %v3021_v15  ;;  %2703 = vmatprep.subr.msk.bf16.mxu0 %vm6183_vm15, %v3021_v15  ;;  %vm6188_vm12 = vnez %v5686_v18  ;;  %vm6189_vm15 = vnez %v5688_v29  ;;  %v6250_v18 = vld [vmem:[#allocation37_spill] sm:$0xff]  ;;  %v6252_v29 = vld [vmem:[#allocation38_spill] sm:$0xff] }
 0x144   : > { %2831 = vmatprep.subr.msk.bf16.mxu1 %vm6184_vm3, %v3021_v15  ;;  %vm6191_vm3 = vnez %v6190_v14  ;;  %v6269_v14 = vld [vmem:[#allocation47_spill] sm:$0xff] }
 0x146   : > { %2705 = vmatpush1.bf16.msk.msra.mxu0 %vm6185_vm4, %v3021_v15  ;;  %vm6193_vm4 = vnez %v6192_v16  ;;  %v6271_v16 = vld [vmem:[#allocation49_spill] sm:$0xff] }
 0x147   : > { %2833 = vmatpush1.bf16.msk.msra.mxu1 %vm6186_vm2, %v3021_v15  ;;  %2707 = vmatprep.subr.msk.bf16.mxu0 %vm6187_vm9, %v3021_v15  ;;  %vm6195_vm2 = vnez %v6194_v19  ;;  %vm6197_vm9 = vnez %v6196_v20  ;;  %v6276_v19 = vld [vmem:[#allocation52_spill] sm:$0xff]  ;;  %v6278_v20 = vld [vmem:[#allocation53_spill] sm:$0xff] }
 0x148   : > { %2835 = vmatprep.subr.msk.bf16.mxu1 %vm6188_vm12, %v3021_v15  ;;  %vm6199_vm12 = vnez %v6198_v21  ;;  %v6280_v21 = vld [vmem:[#allocation54_spill] sm:$0xff] }
 0x14a   : > { %2709 = vmatpush1.bf16.msk.msra.mxu0 %vm6189_vm15, %v3021_v15  ;;  %vm6201_vm15 = vnez %v6200_v22  ;;  %v6283_v22 = vld [vmem:[#allocation57_spill] sm:$0xff] }
 0x14b   : > { %2837 = vmatpush1.bf16.msk.msra.mxu1 %vm6191_vm3, %v3021_v15  ;;  %2711 = vmatprep.subr.msk.bf16.mxu0 %vm6193_vm4, %v3021_v15  ;;  %vm6203_vm3 = vnez %v6202_v25  ;;  %vm6205_vm4 = vnez %v6204_v26  ;;  %v6287_v25 = vld [vmem:[#allocation59_spill] sm:$0xff]  ;;  %v6289_v26 = vld [vmem:[#allocation61_spill] sm:$0xff] }
 0x14c   : > { %2839 = vmatprep.subr.msk.bf16.mxu1 %vm6195_vm2, %v3021_v15  ;;  %vm6207_vm2 = vnez %v6206_v27  ;;  %v6291_v27 = vld [vmem:[#allocation62_spill] sm:$0xff] }
 0x14e   : > { %2713 = vmatpush1.bf16.msk.msra.mxu0 %vm6197_vm9, %v3021_v15  ;;  %vm6209_vm9 = vnez %v6208_v28  ;;  %v6295_v28 = vld [vmem:[#allocation64_spill] sm:$0xff] }
 0x14f   : > { %2841 = vmatpush1.bf16.msk.msra.mxu1 %vm6199_vm12, %v3021_v15  ;;  %2715 = vmatprep.subr.msk.bf16.mxu0 %vm6201_vm15, %v3021_v15  ;;  %vm6212_vm12 = vnez %v6211_v33  ;;  %vm6215_vm15 = vnez %v6214_v38  ;;  %v6301_v33 = vld [vmem:[#allocation67_spill] sm:$0xff]  ;;  %v6307_v38 = vld [vmem:[#allocation70_spill] sm:$0xff] }
 0x150   : > { %2843 = vmatprep.subr.msk.bf16.mxu1 %vm6203_vm3, %v3021_v15  ;;  %vm6217_vm3 = vnez %v6216_v39  ;;  %v6309_v39 = vld [vmem:[#allocation71_spill] sm:$0xff] }
 0x152   : > { %2717 = vmatpush1.bf16.msk.msra.mxu0 %vm6205_vm4, %v3021_v15  ;;  %vm6219_vm4 = vnez %v6218_v40  ;;  %v6311_v40 = vld [vmem:[#allocation72_spill] sm:$0xff] }
 0x153   : > { %2845 = vmatpush1.bf16.msk.msra.mxu1 %vm6207_vm2, %v3021_v15  ;;  %2719 = vmatprep.subr.msk.bf16.mxu0 %vm6209_vm9, %v3021_v15  ;;  %vm6220_vm2 = vnez %v6020_v35  ;;  %vm6222_vm9 = vnez %v6221_v44  ;;  %v6260_v35 = vld [vmem:[#allocation42_spill] sm:$0xff] }
 0x154   : > { %2847 = vmatprep.subr.msk.bf16.mxu1 %vm6212_vm12, %v3021_v15  ;;  %vm6224_vm12 = vnez %v6223_v45  ;;  %v6315_v44 = vld [vmem:[#allocation74_spill] sm:$0xff]  ;;  %v6317_v45 = vld [vmem:[#allocation75_spill] sm:$0xff] }
 0x156   : > { %2721 = vmatpush1.bf16.msk.msra.mxu0 %vm6215_vm15, %v3021_v15  ;;  %vm6226_vm15 = vnez %v6225_v46  ;;  %v6319_v46 = vld [vmem:[#allocation76_spill] sm:$0xff] }
 0x157   : > { %2849 = vmatpush1.bf16.msk.msra.mxu1 %vm6217_vm3, %v3021_v15  ;;  %2723 = vmatprep.subr.msk.bf16.mxu0 %vm6219_vm4, %v3021_v15  ;;  %vm6228_vm3 = vnez %v6227_v49  ;;  %vm6231_vm4 = vnez %v6230_v52  ;;  %v6321_v49 = vld [vmem:[#allocation77_spill] sm:$0xff]  ;;  %v6325_v52 = vld [vmem:[#allocation79_spill] sm:$0xff] }
 0x158   : > { %2851 = vmatprep.subr.msk.bf16.mxu1 %vm6220_vm2, %v3021_v15  ;;  %vm6232_vm2 = vnez %v6034_v36  ;;  %v6254_v36 = vld [vmem:[#allocation39_spill] sm:$0xff] }
 0x15a   : > { %2725 = vmatpush1.bf16.msk.msra.mxu0 %vm6222_vm9, %v3021_v15  ;;  %vm6234_vm9 = vnez %v6233_v55  ;;  %v6327_v55 = vld [vmem:[#allocation80_spill] sm:$0xff] }
 0x15b   : > { %2853 = vmatpush1.bf16.msk.msra.mxu1 %vm6224_vm12, %v3021_v15  ;;  %2727 = vmatprep.subr.msk.bf16.mxu0 %vm6226_vm15, %v3021_v15  ;;  %vm6236_vm12 = vnez %v6235_v56  ;;  %vm6238_vm15 = vnez %v6237_v62  ;;  %v6331_v56 = vld [vmem:[#allocation83_spill] sm:$0xff] }
 0x15c   : > { %2855 = vmatprep.subr.msk.bf16.mxu1 %vm6228_vm3, %v3021_v15  ;;  %vm6240_vm3 = vnez %v6239_v63 }
 0x15e   : > { %2729 = vmatpush1.bf16.msk.msra.mxu0 %vm6231_vm4, %v3021_v15  ;;  %vm6242_vm4 = vnez %v6241_v0 }
 0x15f   : > { %2857 = vmatpush1.bf16.msk.msra.mxu1 %vm6232_vm2, %v3021_v15  ;;  %2731 = vmatprep.subr.msk.bf16.mxu0 %vm6234_vm9, %v3021_v15  ;;  %vm6243_vm2 = vnez %v6046_v47  ;;  %vm6245_vm9 = vnez %v6244_v6  ;;  %v6263_v47 = vld [vmem:[#allocation44_spill] sm:$0xff] }
 0x160   : > { %2859 = vmatprep.subr.msk.bf16.mxu1 %vm6236_vm12, %v3021_v15  ;;  %vm6247_vm12 = vnez %v6246_v7 }
 0x162   : > { %2733 = vmatpush1.bf16.msk.msra.mxu0 %vm6238_vm15, %v3021_v15  ;;  %vm6249_vm15 = vnez %v6248_v8 }
 0x163   : > { %2861 = vmatpush1.bf16.msk.msra.mxu1 %vm6240_vm3, %v3021_v15  ;;  %2735 = vmatprep.subr.msk.bf16.mxu0 %vm6242_vm4, %v3021_v15  ;;  %vm6251_vm3 = vnez %v6250_v18  ;;  %vm6253_vm4 = vnez %v6252_v29 }
 0x164   : > { %2863 = vmatprep.subr.msk.bf16.mxu1 %vm6243_vm2, %v3021_v15  ;;  %vm6255_vm2 = vnez %v6254_v36 }
 0x165   : > { %1631 = vmatmul.mubr.bf16.vlgmr.msra.gmra.mrb[0].mxu0 %v1266_v58 }
 0x166   : > { %2737 = vmatpush1.bf16.msk.msra.mxu0 %vm6245_vm9, %v3021_v15  ;;  %1713 = vmatmul.mubr.bf16.vlgmr.msra.gmra.mrb[0].mxu1 %v1266_v58  ;;  %vm6257_vm9 = vnez %v6256_v42 }
 0x167   : > { %2865 = vmatpush1.bf16.msk.msra.mxu1 %vm6247_vm12, %v3021_v15  ;;  %2739 = vmatprep.subr.msk.bf16.mxu0 %vm6249_vm15, %v3021_v15  ;;  %vm6259_vm12 = vnez %v6258_v11  ;;  %vm6261_vm15 = vnez %v6260_v35 }
 0x168   : > { %2867 = vmatprep.subr.msk.bf16.mxu1 %vm6251_vm3, %v3021_v15  ;;  %1671 = vmatprep.mubr.bf16.mxu0 %v1269_v3  ;;  %vm6262_vm3 = vnez %v6067_v53  ;;  %v6273_v53 = vld [vmem:[#allocation50_spill] sm:$0xff] }
 0x169   : > { %1753 = vmatprep.mubr.bf16.mxu1 %v1269_v3 }
 0x16a   : > { %2741 = vmatpush1.bf16.msk.msra.mxu0 %vm6253_vm4, %v3021_v15  ;;  %vm6264_vm4 = vnez %v6263_v47 }
 0x16b   : > { %2869 = vmatpush1.bf16.msk.msra.mxu1 %vm6255_vm2, %v3021_v15  ;;  %2743 = vmatprep.subr.msk.bf16.mxu0 %vm6257_vm9, %v3021_v15  ;;  %vm6266_vm2 = vnez %v6265_v4  ;;  %vm6268_vm9 = vnez %v6267_v60 }
 0x16c   : > { %2871 = vmatprep.subr.msk.bf16.mxu1 %vm6259_vm12, %v3021_v15  ;;  %vm6270_vm12 = vnez %v6269_v14 }
 0x16e   : > { %2745 = vmatpush1.bf16.msk.msra.mxu0 %vm6261_vm15, %v3021_v15  ;;  %vm6272_vm15 = vnez %v6271_v16 }
 0x16f   : > { %2873 = vmatpush1.bf16.msk.msra.mxu1 %vm6262_vm3, %v3021_v15  ;;  %2747 = vmatprep.subr.msk.bf16.mxu0 %vm6264_vm4, %v3021_v15  ;;  %vm6274_vm3 = vnez %v6273_v53  ;;  %vm6275_vm4 = vnez %v6080_v59  ;;  %v6285_v59 = vld [vmem:[#allocation58_spill] sm:$0xff] }
 0x170   : > { %2875 = vmatprep.subr.msk.bf16.mxu1 %vm6266_vm2, %v3021_v15  ;;  %vm6277_vm2 = vnez %v6276_v19 }
 0x172   : > { %2749 = vmatpush1.bf16.msk.msra.mxu0 %vm6268_vm9, %v3021_v15  ;;  %vm6279_vm9 = vnez %v6278_v20 }
 0x173   : > { %2877 = vmatpush1.bf16.msk.msra.mxu1 %vm6270_vm12, %v3021_v15  ;;  %2751 = vmatprep.subr.msk.bf16.mxu0 %vm6272_vm15, %v3021_v15  ;;  %vm6281_vm12 = vnez %v6280_v21  ;;  %vm6282_vm15 = vnez %v6088_v41  ;;  %v6293_v41 = vld [vmem:[#allocation63_spill] sm:$0xff] }
 0x174   : > { %2879 = vmatprep.subr.msk.bf16.mxu1 %vm6274_vm3, %v3021_v15  ;;  %vm6284_vm3 = vnez %v6283_v22 }
 0x176   : > { %2753 = vmatpush1.bf16.msk.msra.mxu0 %vm6275_vm4, %v3021_v15  ;;  %vm6286_vm4 = vnez %v6285_v59 }
 0x177   : > { %2881 = vmatpush1.bf16.msk.msra.mxu1 %vm6277_vm2, %v3021_v15  ;;  %2755 = vmatprep.subr.msk.bf16.mxu0 %vm6279_vm9, %v3021_v15  ;;  %vm6288_vm2 = vnez %v6287_v25  ;;  %vm6290_vm9 = vnez %v6289_v26 }
 0x178   : > { %2883 = vmatprep.subr.msk.bf16.mxu1 %vm6281_vm12, %v3021_v15  ;;  %vm6292_vm12 = vnez %v6291_v27 }
 0x17a   : > { %2757 = vmatpush1.bf16.msk.msra.mxu0 %vm6282_vm15, %v3021_v15  ;;  %vm6294_vm15 = vnez %v6293_v41 }
 0x17b   : > { %2885 = vmatpush1.bf16.msk.msra.mxu1 %vm6284_vm3, %v3021_v15  ;;  %2759 = vmatprep.subr.msk.bf16.mxu0 %vm6286_vm4, %v3021_v15  ;;  %vm6296_vm3 = vnez %v6295_v28  ;;  %vm6298_vm4 = vnez %v6297_v31 }
 0x17c   : > { %2887 = vmatprep.subr.msk.bf16.mxu1 %vm6288_vm2, %v3021_v15  ;;  %vm6300_vm2 = vnez %v6299_v32 }
 0x17e   : > { %2761 = vmatpush1.bf16.msk.msra.mxu0 %vm6290_vm9, %v3021_v15  ;;  %vm6302_vm9 = vnez %v6301_v33 }
 0x17f   : > { %2889 = vmatpush1.bf16.msk.msra.mxu1 %vm6292_vm12, %v3021_v15  ;;  %2763 = vmatprep.subr.msk.bf16.mxu0 %vm6294_vm15, %v3021_v15  ;;  %vm6304_vm12 = vnez %v6303_v34  ;;  %vm6306_vm15 = vnez %v6305_v37 }
 0x180   : > { %2891 = vmatprep.subr.msk.bf16.mxu1 %vm6296_vm3, %v3021_v15  ;;  %vm6308_vm3 = vnez %v6307_v38 }
 0x182   : > { %2765 = vmatpush1.bf16.msk.msra.mxu0 %vm6298_vm4, %v3021_v15  ;;  %vm6310_vm4 = vnez %v6309_v39 }
 0x183   : > { %2893 = vmatpush1.bf16.msk.msra.mxu1 %vm6300_vm2, %v3021_v15  ;;  %2767 = vmatprep.subr.msk.bf16.mxu0 %vm6302_vm9, %v3021_v15  ;;  %vm6312_vm2 = vnez %v6311_v40  ;;  %vm6314_vm9 = vnez %v6313_v43 }
 0x184   : > { %2895 = vmatprep.subr.msk.bf16.mxu1 %vm6304_vm12, %v3021_v15  ;;  %vm6316_vm12 = vnez %v6315_v44 }
 0x186   : > { %2769 = vmatpush1.bf16.msk.msra.mxu0 %vm6306_vm15, %v3021_v15  ;;  %vm6318_vm15 = vnez %v6317_v45 }
 0x187   : > { %2897 = vmatpush1.bf16.msk.msra.mxu1 %vm6308_vm3, %v3021_v15  ;;  %2771 = vmatprep.subr.msk.bf16.mxu0 %vm6310_vm4, %v3021_v15  ;;  %vm6320_vm3 = vnez %v6319_v46  ;;  %vm6322_vm4 = vnez %v6321_v49 }
 0x188   : > { %2899 = vmatprep.subr.msk.bf16.mxu1 %vm6312_vm2, %v3021_v15  ;;  %vm6324_vm2 = vnez %v6323_v50 }
 0x18a   : > { %2773 = vmatpush1.bf16.msk.msra.mxu0 %vm6314_vm9, %v3021_v15  ;;  %vm6326_vm9 = vnez %v6325_v52 }
 0x18b   : > { %2901 = vmatpush1.bf16.msk.msra.mxu1 %vm6316_vm12, %v3021_v15  ;;  %2775 = vmatprep.subr.msk.bf16.mxu0 %vm6318_vm15, %v3021_v15  ;;  %vm6328_vm12 = vnez %v6327_v55  ;;  %vm6329_vm15 = vnez %v6134_v24 }
 0x18c   : > { %2903 = vmatprep.subr.msk.bf16.mxu1 %vm6320_vm3, %v3021_v15  ;;  %vm6330_vm3 = vnez %v6136_v23  ;;  %v6337_v23 = vld [vmem:[#allocation88_spill] sm:$0xff] }
 0x18e   : > { %2777 = vmatpush1.bf16.msk.msra.mxu0 %vm6322_vm4, %v3021_v15  ;;  %vm6332_vm4 = vnez %v6331_v56 }
 0x18f   : > { %2905 = vmatpush1.bf16.msk.msra.mxu1 %vm6324_vm2, %v3021_v15  ;;  %2779 = vmatprep.subr.msk.bf16.mxu0 %vm6326_vm9, %v3021_v15  ;;  %vm6333_vm2 = vnez %v6140_v17  ;;  %vm6334_vm9 = vnez %v6142_v2 }
 0x190   : > { %2907 = vmatprep.subr.msk.bf16.mxu1 %vm6328_vm12, %v3021_v15  ;;  %vm6335_vm12 = vnez %v6144_v54 }
 0x192   : > { %2781 = vmatpush1.bf16.msk.msra.mxu0 %vm6329_vm15, %v3021_v15  ;;  %vm6338_vm15 = vnez %v6337_v23 }
 0x193   : > { %2909 = vmatpush1.bf16.msk.msra.mxu1 %vm6330_vm3, %v3021_v15  ;;  %2783 = vmatprep.subr.msk.bf16.mxu0 %vm6332_vm4, %v3021_v15 }
 0x194   : > { %2911 = vmatprep.subr.msk.bf16.mxu1 %vm6333_vm2, %v3021_v15 }
 0x196   : > { %2785 = vmatpush1.bf16.msk.msra.mxu0 %vm6334_vm9, %v3021_v15 }
 0x197   : > { %2913 = vmatpush1.bf16.msk.msra.mxu1 %vm6335_vm12, %v3021_v15  ;;  %2787 = vmatprep.subr.msk.bf16.mxu0 %vm6146_vm10, %v3021_v15 }
 0x198   : > { %2915 = vmatprep.subr.msk.bf16.mxu1 %vm6338_vm15, %v3021_v15 }
 0x19a   : > { %2789 = vmatpush1.bf16.msk.msra.mxu0 %vm6149_vm1, %v3021_v15 }
 0x19b   : > { %2917 = vmatpush1.bf16.msk.msra.mxu1 %vm6150_vm5, %v3021_v15  ;;  %2791 = vmatprep.subr.msk.bf16.mxu0 %vm6151_vm14, %v3021_v15 }
 0x19c   : > { %2919 = vmatprep.subr.msk.bf16.mxu1 %vm6152_vm13, %v3021_v15  ;;  %vm6340_vm13 = vnez %v5961_v13 }
 0x19e   : > { %2793 = vmatpush1.bf16.msk.msra.mxu0 %vm6154_vm7, %v3021_v15 }
 0x19f   : > { %2921 = vmatpush1.bf16.msk.msra.mxu1 %vm4351_vm8, %v3021_v15  ;;  %2795 = vmatprep.subr.msk.bf16.mxu0 %vm4360_vm0, %v3021_v15 }
 0x1a0   : > { %2923 = vmatprep.subr.msk.bf16.mxu1 %vm4369_vm6, %v3021_v15 }
 0x1a2   : > { %2797 = vmatpush1.bf16.msk.msra.mxu0 %vm4376_vm11, %v3021_v15 }
 0x1a3   : > { %2925 = vmatpush1.bf16.msk.msra.mxu1 %vm6340_vm13, %v3021_v15 }
 0x1a5   : > { %1672 = vmatmul.mubr.bf16.vlgmr.msra.gmra.mrb[0].mxu0 %v1268_v5 }
 0x1a6   : > { %1754 = vmatmul.mubr.bf16.vlgmr.msra.gmra.mrb[0].mxu1 %v1268_v5 }
 0x278   : > { %v1673_v30 = vpop.f32.mrb[0].mxu0 }
 0x279   : > { %v1755_v9 = vpop.f32.mrb[0].mxu1  ;;  %v1675_v1 = vpop.f32.mrb[1].mxu0 }
 0x27a   : > { %v1772_v48 = vcombine.low %v1673_v30, %v1675_v1  ;;  %v1757_v61 = vpop.f32.mrb[1].mxu1  ;;  %v1677_v10 = vpop.f32.mrb[2].mxu0 }
 0x27b   : > { %v1773_v54 = vcombine.low %v1755_v9, %v1757_v61  ;;  %v1759_v12 = vpop.f32.mrb[2].mxu1  ;;  %v1678_v17 = vpop.f32.mrb[3].mxu0 }
 0x27c   : > { %1785 = vst [vmem:[%s221_s23] sm:$0xff] %v1772_v48  ;;  %v1760_v51 = vpop.f32.mrb[3].mxu1 }
 0x27d   : > { %1786 = vst [vmem:[%s221_s23 + $0x8] sm:$0xff] %v1773_v54 }
 0x27e PF: > { %s12_s11 = sadd.s32 1, %s3019_s11   ;;  %s6341_s9 = smov %s3015_s10 }
 0x27f   : > { %p9_p5 = scmp.ge.s32.totalorder %s12_s11, 4   ;;  %s6342_s10 = smov %s6344_s12 }
 0x281   :  { %11 = sbr.rel (!%p9_p5) target bundleno = 2 (0x2), region = 69 }

</bundles_post_ra>
